<compile_context>
chip_gen: v5e
topology: v5e:2x2
jax: 0.10.0
libtpu: 0.0.40
codegen_flags: <defaults>
</compile_context>

<pallas_src>
import numpy as np
import jax
import jax.numpy as jnp
from jax import lax
from jax.experimental import pallas as pl
from jax.experimental.pallas import tpu as pltpu

_EPS = 1e-5
_LANE = 128


def _round_up(n, m):
    return (n + m - 1) // m * m


# --------------------------------------------------------------------------
# Kernel
# --------------------------------------------------------------------------
def make_generator_kernel(layer_cfgs):
    """layer_cfgs: tuple of dicts with static ints/bools (closed over, untraced)."""

    def _conv_t(h, wslab_ref, pslab_ref, t_ref, cfg):
        Kh, BHi, BHo = cfg["Kh"], cfg["BHi"], cfg["BHo"]
        w = wslab_ref[cfg["w_row"]:cfg["w_row"] + _LANE, 0:Kh * _LANE]   # (128, Kh*128)
        tap = jnp.dot(h, w, preferred_element_type=jnp.float32)          # (BHi, Kh*128)
        # Stage the lane-aligned kh blocks as row blocks of the scratch.
        for kh in range(Kh):
            t_ref[kh * BHi:(kh + 1) * BHi, :] = tap[:, kh * _LANE:(kh + 1) * _LANE]
        r = pslab_ref[cfg["r_row"]:cfg["r_row"] + BHo, 0:Kh * BHi]       # (BHo, Kh*BHi)
        return jnp.dot(r, t_ref[0:Kh * BHi, :],
                       preferred_element_type=jnp.float32)               # (BHo, 128)

    def _bn_relu(y, pslab_ref, cfg):
        Co, WoCo, gb_row = cfg["Co"], cfg["WoCo"], cfg["gb_row"]
        inv_cnt = 1.0 / cfg["cnt"]                                       # 1 / (B*Ho*Wo)
        # lane l holds (w, c) = (l // Co, l % Co); valid only for l < Wo*Co.
        lane = lax.broadcasted_iota(jnp.int32, (_LANE, Co), 0)
        chan = lax.broadcasted_iota(jnp.int32, (_LANE, Co), 1)
        sel = ((lane % Co == chan) & (lane < WoCo)).astype(jnp.float32)        # (128, Co)
        lane_t = lax.broadcasted_iota(jnp.int32, (Co, _LANE), 1)
        chan_t = lax.broadcasted_iota(jnp.int32, (Co, _LANE), 0)
        sel_t = ((lane_t % Co == chan_t) & (lane_t < WoCo)).astype(jnp.float32)  # (Co, 128)
        # Row-reduce first (XLU), then tiny M=1 channel-sum matmuls.
        sum_y = jnp.sum(y, axis=0, keepdims=True)                        # (1, 128)
        sum_y2 = jnp.sum(y * y, axis=0, keepdims=True)                   # (1, 128)
        mean = jnp.dot(sum_y, sel, preferred_element_type=jnp.float32) * inv_cnt   # (1, Co)
        ex2 = jnp.dot(sum_y2, sel, preferred_element_type=jnp.float32) * inv_cnt   # (1, Co)
        var = ex2 - mean * mean          # one-pass biased batch var (fine at this scale)
        rstd = lax.rsqrt(var + _EPS)
        gamma = pslab_ref[gb_row:gb_row + 1, 0:Co]                       # (1, Co)
        beta = pslab_ref[gb_row + 1:gb_row + 2, 0:Co]                    # (1, Co)
        scale = rstd * gamma
        shift = beta - mean * scale
        scale_f = jnp.dot(scale, sel_t, preferred_element_type=jnp.float32)   # (1, 128)
        shift_f = jnp.dot(shift, sel_t, preferred_element_type=jnp.float32)   # (1, 128)
        return jnp.maximum(y * scale_f + shift_f, 0.0)                   # BN + ReLU

    def kernel(x_ref, wslab_ref, pslab_ref, o_ref, t_ref):
        h = x_ref[...]                                                   # (B, 128)
        for cfg in layer_cfgs:
            y = _conv_t(h, wslab_ref, pslab_ref, t_ref, cfg)
            if cfg["bn"]:
                h = _bn_relu(y, pslab_ref, cfg)
            else:
                bias = pslab_ref[cfg["gb_row"]:cfg["gb_row"] + 1, :]     # (1, 128)
                h = jnp.tanh(y + bias)
        o_ref[...] = h                                                   # (B*Ho4, 128)

    return kernel


def generator_pallas(x_pad, wslab, pslab, layer_cfgs, out_rows, t_rows, cost):
    vmem = pl.BlockSpec(memory_space=pltpu.MemorySpace.VMEM)
    return pl.pallas_call(
        make_generator_kernel(layer_cfgs),
        out_shape=jax.ShapeDtypeStruct((out_rows, _LANE), jnp.float32),
        in_specs=[vmem, vmem, vmem],
        out_specs=vmem,
        scratch_shapes=[pltpu.VMEM((t_rows, _LANE), jnp.float32)],
        cost_estimate=cost,
    )(x_pad, wslab, pslab)


# --------------------------------------------------------------------------
# Host-side builders (numpy, trace-time).
# --------------------------------------------------------------------------
def build_layer_mats(w_np, Hi, Wi, stride, batch):
    """W_stacked (128, Kh*128) with 128-padded kh blocks, and R_cat (B*Ho, Kh*B*Hi)."""
    Ci, Co, Kh, Kw = w_np.shape
    Ho = (Hi - 1) * stride + Kh
    Wo = (Wi - 1) * stride + Kw
    Wst = np.zeros((_LANE, Kh * _LANE), np.float32)
    for kh in range(Kh):
        for iw in range(Wi):
            for kw in range(Kw):
                ow = iw * stride + kw
                Wst[iw * Ci:(iw + 1) * Ci,
                    kh * _LANE + ow * Co: kh * _LANE + (ow + 1) * Co] = w_np[:, :, kh, kw]
    BHi, BHo = batch * Hi, batch * Ho
    Rc = np.zeros((BHo, Kh * BHi), np.float32)
    for kh in range(Kh):
        for bi in range(batch):
            for ih in range(Hi):
                Rc[bi * Ho + ih * stride + kh, kh * BHi + bi * Hi + ih] = 1.0
    return Wst, Rc, Ho, Wo


# --------------------------------------------------------------------------
# Pure numpy reference (direct conv-transpose + training-mode BN), f64.
# --------------------------------------------------------------------------
def conv_transpose_ref(x, w, b, s):
    N, Ci, Hi, Wi = x.shape
    _, Co, Kh, Kw = w.shape
    Ho, Wo = (Hi - 1) * s + Kh, (Wi - 1) * s + Kw
    out = np.zeros((N, Co, Ho, Wo), dtype=np.float64)
    for n in range(N):
        for ih in range(Hi):
            for iw in range(Wi):
                out[n, :, ih * s:ih * s + Kh, iw * s:iw * s + Kw] += np.einsum(
                    'i,iokl->okl', x[n, :, ih, iw], w)
    return out + b[None, :, None, None]


def bn_relu_ref(x, gamma, beta):
    mean = x.mean(axis=(0, 2, 3), keepdims=True)
    var = x.var(axis=(0, 2, 3), keepdims=True)                   # biased var
    xn = (x - mean) / np.sqrt(var + _EPS)
    return np.maximum(xn * gamma[None, :, None, None] + beta[None, :, None, None], 0.0)


# --------------------------------------------------------------------------
if __name__ == "__main__":
    B, noise_dim, image_channel, hidden_dim = 2, 16, 1, 8
    # (in_ch, out_ch, kernel, stride) for the 4 ConvTranspose2d layers
    configs = [
        (noise_dim, hidden_dim * 4, 3, 2),
        (hidden_dim * 4, hidden_dim * 2, 4, 1),
        (hidden_dim * 2, hidden_dim, 3, 2),
        (hidden_dim, image_channel, 4, 2),
    ]

    keys = jax.random.split(jax.random.PRNGKey(0), 16)
    ki = 0
    ws, bs, gammas, betas = [], [], [], []
    for (cin, cout, k, s) in configs:
        ws.append(0.1 * jax.random.normal(keys[ki], (cin, cout, k, k), jnp.float32)); ki += 1
        bs.append(0.05 * jax.random.normal(keys[ki], (cout,), jnp.float32)); ki += 1
    for (cin, cout, k, s) in configs[:3]:
        gammas.append(1.0 + 0.1 * jax.random.normal(keys[ki], (cout,), jnp.float32)); ki += 1
        betas.append(0.05 * jax.random.normal(keys[ki], (cout,), jnp.float32)); ki += 1
    x = jax.random.normal(keys[-1], (B, noise_dim), jnp.float32)

    # ---- build the two parameter slabs and the static per-layer configs ----
    n_layers = len(configs)
    wslab = np.zeros((n_layers * _LANE, 4 * _LANE), np.float32)      # (512, 512)
    layer_cfgs, r_mats = [], []
    Hi = Wi = 1
    for li, (cin, cout, k, s) in enumerate(configs):
        Wst, Rc, Ho, Wo = build_layer_mats(np.asarray(ws[li], np.float32), Hi, Wi, s, B)
        wslab[li * _LANE:(li + 1) * _LANE, :Wst.shape[1]] = Wst
        r_mats.append(Rc)
        layer_cfgs.append(dict(
            Kh=k, BHi=B * Hi, BHo=B * Ho, Co=cout, WoCo=Wo * cout,
            cnt=float(B * Ho * Wo), w_row=li * _LANE, bn=(li < 3),
            r_row=0, gb_row=0))
        Hi, Wi = Ho, Wo
    H_out, W_out = Hi, Wi                                            # 28, 28

    r_row = 0
    for li in range(n_layers):
        layer_cfgs[li]["r_row"] = r_row
        r_row += _round_up(layer_cfgs[li]["BHo"], 8)
    gb_base = _round_up(r_row, 8)                                    # 112
    pslab = np.zeros((_round_up(gb_base + 7, 8), _LANE), np.float32)  # (120, 128)
    for li in range(n_layers):
        Rc = r_mats[li]
        pslab[layer_cfgs[li]["r_row"]:layer_cfgs[li]["r_row"] + Rc.shape[0], :Rc.shape[1]] = Rc
    for li in range(3):                                              # gamma / beta rows
        co = configs[li][1]
        layer_cfgs[li]["gb_row"] = gb_base + 2 * li
        pslab[gb_base + 2 * li, :co] = np.asarray(gammas[li], np.float32)
        pslab[gb_base + 2 * li + 1, :co] = np.asarray(betas[li], np.float32)
    layer_cfgs[3]["gb_row"] = gb_base + 6                            # final conv bias row
    pslab[gb_base + 6, :W_out * image_channel] = np.tile(
        np.asarray(bs[3], np.float32), W_out)
    # NOTE: conv biases of the BN layers are intentionally dropped (BatchNorm's
    # mean subtraction cancels any per-channel constant exactly).

    x_pad = np.zeros((B, _LANE), np.float32)
    x_pad[:, :noise_dim] = np.asarray(x, np.float32)

    out_rows = layer_cfgs[-1]["BHo"]                                 # 56
    t_rows = _round_up(max(c["Kh"] * c["BHi"] for c in layer_cfgs), 8)

    flops = 0
    for cfg in layer_cfgs:
        flops += 2 * cfg["BHi"] * _LANE * cfg["Kh"] * _LANE          # tap matmul
        flops += 2 * cfg["BHo"] * cfg["Kh"] * cfg["BHi"] * _LANE     # scatter matmul
        if cfg["bn"]:
            flops += 4 * 2 * _LANE * cfg["Co"] + 6 * cfg["BHo"] * _LANE
    transcendentals = sum(c["Co"] for c in layer_cfgs if c["bn"]) + out_rows * _LANE
    bytes_accessed = 4 * (x_pad.size + wslab.size + pslab.size + out_rows * _LANE)
    cost = pl.CostEstimate(flops=int(flops), transcendentals=int(transcendentals),
                           bytes_accessed=int(bytes_accessed))

    out_full = generator_pallas(jnp.asarray(x_pad), jnp.asarray(wslab), jnp.asarray(pslab),
                                tuple(layer_cfgs), out_rows, t_rows, cost)
    out_full = jax.block_until_ready(out_full)
    out = np.asarray(out_full)[:, :W_out * image_channel]
    out = out.reshape(B, H_out, W_out, image_channel).transpose(0, 3, 1, 2)   # NCHW

    # Numpy f64 reference of the exact PyTorch forward (training-mode BN, with
    # the conv biases the kernel omits -- BN cancels them, outputs must match).
    h_ref = np.asarray(x, np.float64).reshape(B, noise_dim, 1, 1)
    for li, (cin, cout, k, s) in enumerate(configs):
        h_ref = conv_transpose_ref(h_ref, np.asarray(ws[li], np.float64),
                                   np.asarray(bs[li], np.float64), s)
        if li < 3:
            h_ref = bn_relu_ref(h_ref, np.asarray(gammas[li], np.float64),
                                np.asarray(betas[li], np.float64))
        else:
            h_ref = np.tanh(h_ref)

    assert out.shape == (B, image_channel, 28, 28), out.shape
    assert np.allclose(out, h_ref, atol=2e-3, rtol=2e-3), \
        float(np.max(np.abs(out - h_ref)))
    print("KERNEL_OK")
</pallas_src>

<mosaic_0001>
module attributes {stable_mosaic.version = 11 : i64} {
  func.func @kernel(%arg0: memref<2x128xf32, #tpu.memory_space<vmem>>, %arg1: memref<512x512xf32, #tpu.memory_space<vmem>>, %arg2: memref<120x128xf32, #tpu.memory_space<vmem>>, %arg3: memref<56x128xf32, #tpu.memory_space<vmem>>, %arg4: memref<104x128xf32, #tpu.memory_space<vmem>>) attributes {dimension_semantics = [], scalar_prefetch = 0 : i64, scratch_operands = 1 : i64, tpu.core_type = #tpu.core_type<tc>} {
    %c0 = arith.constant 0 : index
    %c0_0 = arith.constant 0 : index
    %0 = vector.load %arg0[%c0, %c0_0] : memref<2x128xf32, #tpu.memory_space<vmem>>, vector<2x128xf32>
    %c0_1 = arith.constant 0 : index
    %c0_2 = arith.constant 0 : index
    %1 = vector.load %arg1[%c0_1, %c0_2] : memref<512x512xf32, #tpu.memory_space<vmem>>, vector<128x384xf32>
    %cst = arith.constant dense<0.000000e+00> : vector<2x384xf32>
    %2 = tpu.matmul %0, %1, %cst {dimension_numbers = #tpu.dot_dimension_numbers<[1], [0], [0], [1], [0, 0, 1, 1], [], []>} : vector<2x128xf32>, vector<128x384xf32>, vector<2x384xf32> -> vector<2x384xf32>
    %3 = vector.extract_strided_slice %2 {offsets = [0, 0], sizes = [2, 128], strides = [1, 1]} : vector<2x384xf32> to vector<2x128xf32>
    %c0_3 = arith.constant 0 : index
    %c0_4 = arith.constant 0 : index
    %4 = vector.load %arg4[%c0_3, %c0_4] : memref<104x128xf32, #tpu.memory_space<vmem>>, vector<2x128xf32>
    tpu.vector_store %arg4[%c0_3, %c0_4], %3 {strides = array<i32>} : memref<104x128xf32, #tpu.memory_space<vmem>>, vector<2x128xf32>,
    %5 = vector.extract_strided_slice %2 {offsets = [0, 128], sizes = [2, 128], strides = [1, 1]} : vector<2x384xf32> to vector<2x128xf32>
    %c2 = arith.constant 2 : index
    %c0_5 = arith.constant 0 : index
    %6 = vector.load %arg4[%c2, %c0_5] : memref<104x128xf32, #tpu.memory_space<vmem>>, vector<2x128xf32>
    tpu.vector_store %arg4[%c2, %c0_5], %5 {strides = array<i32>} : memref<104x128xf32, #tpu.memory_space<vmem>>, vector<2x128xf32>,
    %7 = vector.extract_strided_slice %2 {offsets = [0, 256], sizes = [2, 128], strides = [1, 1]} : vector<2x384xf32> to vector<2x128xf32>
    %c4 = arith.constant 4 : index
    %c0_6 = arith.constant 0 : index
    %8 = vector.load %arg4[%c4, %c0_6] : memref<104x128xf32, #tpu.memory_space<vmem>>, vector<2x128xf32>
    tpu.vector_store %arg4[%c4, %c0_6], %7 {strides = array<i32>} : memref<104x128xf32, #tpu.memory_space<vmem>>, vector<2x128xf32>,
    %c0_7 = arith.constant 0 : index
    %c0_8 = arith.constant 0 : index
    %9 = vector.load %arg2[%c0_7, %c0_8] : memref<120x128xf32, #tpu.memory_space<vmem>>, vector<6x6xf32>
    %c0_9 = arith.constant 0 : index
    %c0_10 = arith.constant 0 : index
    %10 = vector.load %arg4[%c0_9, %c0_10] : memref<104x128xf32, #tpu.memory_space<vmem>>, vector<6x128xf32>
    %cst_11 = arith.constant dense<0.000000e+00> : vector<6x128xf32>
    %11 = tpu.matmul %9, %10, %cst_11 {dimension_numbers = #tpu.dot_dimension_numbers<[1], [0], [0], [1], [0, 0, 1, 1], [], []>} : vector<6x6xf32>, vector<6x128xf32>, vector<6x128xf32> -> vector<6x128xf32>
    %12 = tpu.iota {dimensions = array<i32: 0>} : vector<128x32xi32>
    %13 = tpu.iota {dimensions = array<i32: 1>} : vector<128x32xi32>
    %c32_i32 = arith.constant 32 : i32
    %c0_i32 = arith.constant 0 : i32
    %14 = arith.cmpi eq, %c32_i32, %c0_i32 : i32
    %c1_i32 = arith.constant 1 : i32
    %15 = arith.select %14, %c1_i32, %c32_i32 : i32
    %16 = vector.broadcast %15 : i32 to vector<128x32xi32>
    %17 = arith.remsi %12, %16 : vector<128x32xi32>
    %c0_i32_12 = arith.constant 0 : i32
    %18 = vector.broadcast %c0_i32_12 : i32 to vector<128x32xi32>
    %19 = arith.cmpi ne, %17, %18 : vector<128x32xi32>
    %c0_i32_13 = arith.constant 0 : i32
    %20 = vector.broadcast %c0_i32_13 : i32 to vector<128x32xi32>
    %21 = arith.cmpi slt, %17, %20 : vector<128x32xi32>
    %c0_i32_14 = arith.constant 0 : i32
    %22 = arith.cmpi slt, %15, %c0_i32_14 : i32
    %23 = vector.broadcast %22 : i1 to vector<128x32xi1>
    %24 = vector.broadcast %23 : vector<128x32xi1> to vector<128x32xi1>
    %25 = arith.xori %21, %24 : vector<128x32xi1>
    %26 = arith.andi %25, %19 : vector<128x32xi1>
    %27 = vector.broadcast %15 : i32 to vector<128x32xi32>
    %28 = arith.addi %17, %27 : vector<128x32xi32>
    %29 = arith.select %26, %28, %17 : vector<128x32xi1>, vector<128x32xi32>
    %30 = arith.cmpi eq, %29, %13 : vector<128x32xi32>
    %c96_i32 = arith.constant 96 : i32
    %31 = vector.broadcast %c96_i32 : i32 to vector<128x32xi32>
    %32 = arith.cmpi slt, %12, %31 : vector<128x32xi32>
    %33 = arith.andi %30, %32 : vector<128x32xi1>
    %34 = arith.extui %33 : vector<128x32xi1> to vector<128x32xi32>
    %35 = arith.sitofp %34 : vector<128x32xi32> to vector<128x32xf32>
    %36 = tpu.iota {dimensions = array<i32: 1>} : vector<32x128xi32>
    %37 = tpu.iota {dimensions = array<i32: 0>} : vector<32x128xi32>
    %c32_i32_15 = arith.constant 32 : i32
    %c0_i32_16 = arith.constant 0 : i32
    %38 = arith.cmpi eq, %c32_i32_15, %c0_i32_16 : i32
    %c1_i32_17 = arith.constant 1 : i32
    %39 = arith.select %38, %c1_i32_17, %c32_i32_15 : i32
    %40 = vector.broadcast %39 : i32 to vector<32x128xi32>
    %41 = arith.remsi %36, %40 : vector<32x128xi32>
    %c0_i32_18 = arith.constant 0 : i32
    %42 = vector.broadcast %c0_i32_18 : i32 to vector<32x128xi32>
    %43 = arith.cmpi ne, %41, %42 : vector<32x128xi32>
    %c0_i32_19 = arith.constant 0 : i32
    %44 = vector.broadcast %c0_i32_19 : i32 to vector<32x128xi32>
    %45 = arith.cmpi slt, %41, %44 : vector<32x128xi32>
    %c0_i32_20 = arith.constant 0 : i32
    %46 = arith.cmpi slt, %39, %c0_i32_20 : i32
    %47 = vector.broadcast %46 : i1 to vector<32x128xi1>
    %48 = vector.broadcast %47 : vector<32x128xi1> to vector<32x128xi1>
    %49 = arith.xori %45, %48 : vector<32x128xi1>
    %50 = arith.andi %49, %43 : vector<32x128xi1>
    %51 = vector.broadcast %39 : i32 to vector<32x128xi32>
    %52 = arith.addi %41, %51 : vector<32x128xi32>
    %53 = arith.select %50, %52, %41 : vector<32x128xi1>, vector<32x128xi32>
    %54 = arith.cmpi eq, %53, %37 : vector<32x128xi32>
    %c96_i32_21 = arith.constant 96 : i32
    %55 = vector.broadcast %c96_i32_21 : i32 to vector<32x128xi32>
    %56 = arith.cmpi slt, %36, %55 : vector<32x128xi32>
    %57 = arith.andi %54, %56 : vector<32x128xi1>
    %58 = arith.extui %57 : vector<32x128xi1> to vector<32x128xi32>
    %59 = arith.sitofp %58 : vector<32x128xi32> to vector<32x128xf32>
    %cst_22 = arith.constant dense<0.000000e+00> : vector<128xf32>
    %60 = vector.multi_reduction <add>, %11, %cst_22 [0] : vector<6x128xf32> to vector<128xf32>
    %61 = vector.shape_cast %60 : vector<128xf32> to vector<1x128xf32>
    %62 = arith.mulf %11, %11 : vector<6x128xf32>
    %cst_23 = arith.constant dense<0.000000e+00> : vector<128xf32>
    %63 = vector.multi_reduction <add>, %62, %cst_23 [0] : vector<6x128xf32> to vector<128xf32>
    %64 = vector.shape_cast %63 : vector<128xf32> to vector<1x128xf32>
    %cst_24 = arith.constant dense<0.000000e+00> : vector<1x32xf32>
    %65 = tpu.matmul %61, %35, %cst_24 {dimension_numbers = #tpu.dot_dimension_numbers<[1], [0], [0], [1], [0, 0, 1, 1], [], []>} : vector<1x128xf32>, vector<128x32xf32>, vector<1x32xf32> -> vector<1x32xf32>
    %cst_25 = arith.constant 0.055555556 : f32
    %66 = vector.broadcast %cst_25 : f32 to vector<1x32xf32>
    %67 = arith.mulf %65, %66 : vector<1x32xf32>
    %cst_26 = arith.constant dense<0.000000e+00> : vector<1x32xf32>
    %68 = tpu.matmul %64, %35, %cst_26 {dimension_numbers = #tpu.dot_dimension_numbers<[1], [0], [0], [1], [0, 0, 1, 1], [], []>} : vector<1x128xf32>, vector<128x32xf32>, vector<1x32xf32> -> vector<1x32xf32>
    %cst_27 = arith.constant 0.055555556 : f32
    %69 = vector.broadcast %cst_27 : f32 to vector<1x32xf32>
    %70 = arith.mulf %68, %69 : vector<1x32xf32>
    %71 = arith.mulf %67, %67 : vector<1x32xf32>
    %72 = arith.subf %70, %71 : vector<1x32xf32>
    %cst_28 = arith.constant 9.99999974E-6 : f32
    %73 = vector.broadcast %cst_28 : f32 to vector<1x32xf32>
    %74 = arith.addf %72, %73 : vector<1x32xf32>
    %75 = math.rsqrt %74 : vector<1x32xf32>
    %c112 = arith.constant 112 : index
    %c0_29 = arith.constant 0 : index
    %76 = vector.load %arg2[%c112, %c0_29] : memref<120x128xf32, #tpu.memory_space<vmem>>, vector<1x32xf32>
    %c113 = arith.constant 113 : index
    %c0_30 = arith.constant 0 : index
    %77 = vector.load %arg2[%c113, %c0_30] : memref<120x128xf32, #tpu.memory_space<vmem>>, vector<1x32xf32>
    %78 = arith.mulf %75, %76 : vector<1x32xf32>
    %79 = arith.mulf %67, %78 : vector<1x32xf32>
    %80 = arith.subf %77, %79 : vector<1x32xf32>
    %cst_31 = arith.constant dense<0.000000e+00> : vector<1x128xf32>
    %81 = tpu.matmul %78, %59, %cst_31 {dimension_numbers = #tpu.dot_dimension_numbers<[1], [0], [0], [1], [0, 0, 1, 1], [], []>} : vector<1x32xf32>, vector<32x128xf32>, vector<1x128xf32> -> vector<1x128xf32>
    %cst_32 = arith.constant dense<0.000000e+00> : vector<1x128xf32>
    %82 = tpu.matmul %80, %59, %cst_32 {dimension_numbers = #tpu.dot_dimension_numbers<[1], [0], [0], [1], [0, 0, 1, 1], [], []>} : vector<1x32xf32>, vector<32x128xf32>, vector<1x128xf32> -> vector<1x128xf32>
    %83 = vector.broadcast %81 : vector<1x128xf32> to vector<6x128xf32>
    %84 = arith.mulf %11, %83 : vector<6x128xf32>
    %85 = vector.broadcast %82 : vector<1x128xf32> to vector<6x128xf32>
    %86 = arith.addf %84, %85 : vector<6x128xf32>
    %cst_33 = arith.constant 0.000000e+00 : f32
    %87 = vector.broadcast %cst_33 : f32 to vector<6x128xf32>
    %88 = arith.maximumf %86, %87 : vector<6x128xf32>
    %c128 = arith.constant 128 : index
    %c0_34 = arith.constant 0 : index
    %89 = vector.load %arg1[%c128, %c0_34] : memref<512x512xf32, #tpu.memory_space<vmem>>, vector<128x512xf32>
    %cst_35 = arith.constant dense<0.000000e+00> : vector<6x512xf32>
    %90 = tpu.matmul %88, %89, %cst_35 {dimension_numbers = #tpu.dot_dimension_numbers<[1], [0], [0], [1], [0, 0, 1, 1], [], []>} : vector<6x128xf32>, vector<128x512xf32>, vector<6x512xf32> -> vector<6x512xf32>
    %91 = vector.extract_strided_slice %90 {offsets = [0, 0], sizes = [6, 128], strides = [1, 1]} : vector<6x512xf32> to vector<6x128xf32>
    %c0_36 = arith.constant 0 : index
    %c0_37 = arith.constant 0 : index
    %92 = vector.load %arg4[%c0_36, %c0_37] : memref<104x128xf32, #tpu.memory_space<vmem>>, vector<6x128xf32>
    tpu.vector_store %arg4[%c0_36, %c0_37], %91 {strides = array<i32>} : memref<104x128xf32, #tpu.memory_space<vmem>>, vector<6x128xf32>,
    %93 = vector.extract_strided_slice %90 {offsets = [0, 128], sizes = [6, 128], strides = [1, 1]} : vector<6x512xf32> to vector<6x128xf32>
    %c6 = arith.constant 6 : index
    %c0_38 = arith.constant 0 : index
    %94 = vector.load %arg4[%c6, %c0_38] : memref<104x128xf32, #tpu.memory_space<vmem>>, vector<6x128xf32>
    tpu.vector_store %arg4[%c6, %c0_38], %93 {strides = array<i32>} : memref<104x128xf32, #tpu.memory_space<vmem>>, vector<6x128xf32>,
    %95 = vector.extract_strided_slice %90 {offsets = [0, 256], sizes = [6, 128], strides = [1, 1]} : vector<6x512xf32> to vector<6x128xf32>
    %c12 = arith.constant 12 : index
    %c0_39 = arith.constant 0 : index
    %96 = vector.load %arg4[%c12, %c0_39] : memref<104x128xf32, #tpu.memory_space<vmem>>, vector<6x128xf32>
    tpu.vector_store %arg4[%c12, %c0_39], %95 {strides = array<i32>} : memref<104x128xf32, #tpu.memory_space<vmem>>, vector<6x128xf32>,
    %97 = vector.extract_strided_slice %90 {offsets = [0, 384], sizes = [6, 128], strides = [1, 1]} : vector<6x512xf32> to vector<6x128xf32>
    %c18 = arith.constant 18 : index
    %c0_40 = arith.constant 0 : index
    %98 = vector.load %arg4[%c18, %c0_40] : memref<104x128xf32, #tpu.memory_space<vmem>>, vector<6x128xf32>
    tpu.vector_store %arg4[%c18, %c0_40], %97 {strides = array<i32>} : memref<104x128xf32, #tpu.memory_space<vmem>>, vector<6x128xf32>,
    %c8 = arith.constant 8 : index
    %c0_41 = arith.constant 0 : index
    %99 = vector.load %arg2[%c8, %c0_41] : memref<120x128xf32, #tpu.memory_space<vmem>>, vector<12x24xf32>
    %c0_42 = arith.constant 0 : index
    %c0_43 = arith.constant 0 : index
    %100 = vector.load %arg4[%c0_42, %c0_43] : memref<104x128xf32, #tpu.memory_space<vmem>>, vector<24x128xf32>
    %cst_44 = arith.constant dense<0.000000e+00> : vector<12x128xf32>
    %101 = tpu.matmul %99, %100, %cst_44 {dimension_numbers = #tpu.dot_dimension_numbers<[1], [0], [0], [1], [0, 0, 1, 1], [], []>} : vector<12x24xf32>, vector<24x128xf32>, vector<12x128xf32> -> vector<12x128xf32>
    %102 = tpu.iota {dimensions = array<i32: 0>} : vector<128x16xi32>
    %103 = tpu.iota {dimensions = array<i32: 1>} : vector<128x16xi32>
    %c16_i32 = arith.constant 16 : i32
    %c0_i32_45 = arith.constant 0 : i32
    %104 = arith.cmpi eq, %c16_i32, %c0_i32_45 : i32
    %c1_i32_46 = arith.constant 1 : i32
    %105 = arith.select %104, %c1_i32_46, %c16_i32 : i32
    %106 = vector.broadcast %105 : i32 to vector<128x16xi32>
    %107 = arith.remsi %102, %106 : vector<128x16xi32>
    %c0_i32_47 = arith.constant 0 : i32
    %108 = vector.broadcast %c0_i32_47 : i32 to vector<128x16xi32>
    %109 = arith.cmpi ne, %107, %108 : vector<128x16xi32>
    %c0_i32_48 = arith.constant 0 : i32
    %110 = vector.broadcast %c0_i32_48 : i32 to vector<128x16xi32>
    %111 = arith.cmpi slt, %107, %110 : vector<128x16xi32>
    %c0_i32_49 = arith.constant 0 : i32
    %112 = arith.cmpi slt, %105, %c0_i32_49 : i32
    %113 = vector.broadcast %112 : i1 to vector<128x16xi1>
    %114 = vector.broadcast %113 : vector<128x16xi1> to vector<128x16xi1>
    %115 = arith.xori %111, %114 : vector<128x16xi1>
    %116 = arith.andi %115, %109 : vector<128x16xi1>
    %117 = vector.broadcast %105 : i32 to vector<128x16xi32>
    %118 = arith.addi %107, %117 : vector<128x16xi32>
    %119 = arith.select %116, %118, %107 : vector<128x16xi1>, vector<128x16xi32>
    %120 = arith.cmpi eq, %119, %103 : vector<128x16xi32>
    %c96_i32_50 = arith.constant 96 : i32
    %121 = vector.broadcast %c96_i32_50 : i32 to vector<128x16xi32>
    %122 = arith.cmpi slt, %102, %121 : vector<128x16xi32>
    %123 = arith.andi %120, %122 : vector<128x16xi1>
    %124 = arith.extui %123 : vector<128x16xi1> to vector<128x16xi32>
    %125 = arith.sitofp %124 : vector<128x16xi32> to vector<128x16xf32>
    %126 = tpu.iota {dimensions = array<i32: 1>} : vector<16x128xi32>
    %127 = tpu.iota {dimensions = array<i32: 0>} : vector<16x128xi32>
    %c16_i32_51 = arith.constant 16 : i32
    %c0_i32_52 = arith.constant 0 : i32
    %128 = arith.cmpi eq, %c16_i32_51, %c0_i32_52 : i32
    %c1_i32_53 = arith.constant 1 : i32
    %129 = arith.select %128, %c1_i32_53, %c16_i32_51 : i32
    %130 = vector.broadcast %129 : i32 to vector<16x128xi32>
    %131 = arith.remsi %126, %130 : vector<16x128xi32>
    %c0_i32_54 = arith.constant 0 : i32
    %132 = vector.broadcast %c0_i32_54 : i32 to vector<16x128xi32>
    %133 = arith.cmpi ne, %131, %132 : vector<16x128xi32>
    %c0_i32_55 = arith.constant 0 : i32
    %134 = vector.broadcast %c0_i32_55 : i32 to vector<16x128xi32>
    %135 = arith.cmpi slt, %131, %134 : vector<16x128xi32>
    %c0_i32_56 = arith.constant 0 : i32
    %136 = arith.cmpi slt, %129, %c0_i32_56 : i32
    %137 = vector.broadcast %136 : i1 to vector<16x128xi1>
    %138 = vector.broadcast %137 : vector<16x128xi1> to vector<16x128xi1>
    %139 = arith.xori %135, %138 : vector<16x128xi1>
    %140 = arith.andi %139, %133 : vector<16x128xi1>
    %141 = vector.broadcast %129 : i32 to vector<16x128xi32>
    %142 = arith.addi %131, %141 : vector<16x128xi32>
    %143 = arith.select %140, %142, %131 : vector<16x128xi1>, vector<16x128xi32>
    %144 = arith.cmpi eq, %143, %127 : vector<16x128xi32>
    %c96_i32_57 = arith.constant 96 : i32
    %145 = vector.broadcast %c96_i32_57 : i32 to vector<16x128xi32>
    %146 = arith.cmpi slt, %126, %145 : vector<16x128xi32>
    %147 = arith.andi %144, %146 : vector<16x128xi1>
    %148 = arith.extui %147 : vector<16x128xi1> to vector<16x128xi32>
    %149 = arith.sitofp %148 : vector<16x128xi32> to vector<16x128xf32>
    %cst_58 = arith.constant dense<0.000000e+00> : vector<128xf32>
    %150 = vector.multi_reduction <add>, %101, %cst_58 [0] : vector<12x128xf32> to vector<128xf32>
    %151 = vector.shape_cast %150 : vector<128xf32> to vector<1x128xf32>
    %152 = arith.mulf %101, %101 : vector<12x128xf32>
    %cst_59 = arith.constant dense<0.000000e+00> : vector<128xf32>
    %153 = vector.multi_reduction <add>, %152, %cst_59 [0] : vector<12x128xf32> to vector<128xf32>
    %154 = vector.shape_cast %153 : vector<128xf32> to vector<1x128xf32>
    %cst_60 = arith.constant dense<0.000000e+00> : vector<1x16xf32>
    %155 = tpu.matmul %151, %125, %cst_60 {dimension_numbers = #tpu.dot_dimension_numbers<[1], [0], [0], [1], [0, 0, 1, 1], [], []>} : vector<1x128xf32>, vector<128x16xf32>, vector<1x16xf32> -> vector<1x16xf32>
    %cst_61 = arith.constant 0.013888889 : f32
    %156 = vector.broadcast %cst_61 : f32 to vector<1x16xf32>
    %157 = arith.mulf %155, %156 : vector<1x16xf32>
    %cst_62 = arith.constant dense<0.000000e+00> : vector<1x16xf32>
    %158 = tpu.matmul %154, %125, %cst_62 {dimension_numbers = #tpu.dot_dimension_numbers<[1], [0], [0], [1], [0, 0, 1, 1], [], []>} : vector<1x128xf32>, vector<128x16xf32>, vector<1x16xf32> -> vector<1x16xf32>
    %cst_63 = arith.constant 0.013888889 : f32
    %159 = vector.broadcast %cst_63 : f32 to vector<1x16xf32>
    %160 = arith.mulf %158, %159 : vector<1x16xf32>
    %161 = arith.mulf %157, %157 : vector<1x16xf32>
    %162 = arith.subf %160, %161 : vector<1x16xf32>
    %cst_64 = arith.constant 9.99999974E-6 : f32
    %163 = vector.broadcast %cst_64 : f32 to vector<1x16xf32>
    %164 = arith.addf %162, %163 : vector<1x16xf32>
    %165 = math.rsqrt %164 : vector<1x16xf32>
    %c114 = arith.constant 114 : index
    %c0_65 = arith.constant 0 : index
    %166 = vector.load %arg2[%c114, %c0_65] : memref<120x128xf32, #tpu.memory_space<vmem>>, vector<1x16xf32>
    %c115 = arith.constant 115 : index
    %c0_66 = arith.constant 0 : index
    %167 = vector.load %arg2[%c115, %c0_66] : memref<120x128xf32, #tpu.memory_space<vmem>>, vector<1x16xf32>
    %168 = arith.mulf %165, %166 : vector<1x16xf32>
    %169 = arith.mulf %157, %168 : vector<1x16xf32>
    %170 = arith.subf %167, %169 : vector<1x16xf32>
    %cst_67 = arith.constant dense<0.000000e+00> : vector<1x128xf32>
    %171 = tpu.matmul %168, %149, %cst_67 {dimension_numbers = #tpu.dot_dimension_numbers<[1], [0], [0], [1], [0, 0, 1, 1], [], []>} : vector<1x16xf32>, vector<16x128xf32>, vector<1x128xf32> -> vector<1x128xf32>
    %cst_68 = arith.constant dense<0.000000e+00> : vector<1x128xf32>
    %172 = tpu.matmul %170, %149, %cst_68 {dimension_numbers = #tpu.dot_dimension_numbers<[1], [0], [0], [1], [0, 0, 1, 1], [], []>} : vector<1x16xf32>, vector<16x128xf32>, vector<1x128xf32> -> vector<1x128xf32>
    %173 = vector.broadcast %171 : vector<1x128xf32> to vector<12x128xf32>
    %174 = arith.mulf %101, %173 : vector<12x128xf32>
    %175 = vector.broadcast %172 : vector<1x128xf32> to vector<12x128xf32>
    %176 = arith.addf %174, %175 : vector<12x128xf32>
    %cst_69 = arith.constant 0.000000e+00 : f32
    %177 = vector.broadcast %cst_69 : f32 to vector<12x128xf32>
    %178 = arith.maximumf %176, %177 : vector<12x128xf32>
    %c256 = arith.constant 256 : index
    %c0_70 = arith.constant 0 : index
    %179 = vector.load %arg1[%c256, %c0_70] : memref<512x512xf32, #tpu.memory_space<vmem>>, vector<128x384xf32>
    %cst_71 = arith.constant dense<0.000000e+00> : vector<12x384xf32>
    %180 = tpu.matmul %178, %179, %cst_71 {dimension_numbers = #tpu.dot_dimension_numbers<[1], [0], [0], [1], [0, 0, 1, 1], [], []>} : vector<12x128xf32>, vector<128x384xf32>, vector<12x384xf32> -> vector<12x384xf32>
    %181 = vector.extract_strided_slice %180 {offsets = [0, 0], sizes = [12, 128], strides = [1, 1]} : vector<12x384xf32> to vector<12x128xf32>
    %c0_72 = arith.constant 0 : index
    %c0_73 = arith.constant 0 : index
    %182 = vector.load %arg4[%c0_72, %c0_73] : memref<104x128xf32, #tpu.memory_space<vmem>>, vector<12x128xf32>
    tpu.vector_store %arg4[%c0_72, %c0_73], %181 {strides = array<i32>} : memref<104x128xf32, #tpu.memory_space<vmem>>, vector<12x128xf32>,
    %183 = vector.extract_strided_slice %180 {offsets = [0, 128], sizes = [12, 128], strides = [1, 1]} : vector<12x384xf32> to vector<12x128xf32>
    %c12_74 = arith.constant 12 : index
    %c0_75 = arith.constant 0 : index
    %184 = vector.load %arg4[%c12_74, %c0_75] : memref<104x128xf32, #tpu.memory_space<vmem>>, vector<12x128xf32>
    tpu.vector_store %arg4[%c12_74, %c0_75], %183 {strides = array<i32>} : memref<104x128xf32, #tpu.memory_space<vmem>>, vector<12x128xf32>,
    %185 = vector.extract_strided_slice %180 {offsets = [0, 256], sizes = [12, 128], strides = [1, 1]} : vector<12x384xf32> to vector<12x128xf32>
    %c24 = arith.constant 24 : index
    %c0_76 = arith.constant 0 : index
    %186 = vector.load %arg4[%c24, %c0_76] : memref<104x128xf32, #tpu.memory_space<vmem>>, vector<12x128xf32>
    tpu.vector_store %arg4[%c24, %c0_76], %185 {strides = array<i32>} : memref<104x128xf32, #tpu.memory_space<vmem>>, vector<12x128xf32>,
    %c24_77 = arith.constant 24 : index
    %c0_78 = arith.constant 0 : index
    %187 = vector.load %arg2[%c24_77, %c0_78] : memref<120x128xf32, #tpu.memory_space<vmem>>, vector<26x36xf32>
    %c0_79 = arith.constant 0 : index
    %c0_80 = arith.constant 0 : index
    %188 = vector.load %arg4[%c0_79, %c0_80] : memref<104x128xf32, #tpu.memory_space<vmem>>, vector<36x128xf32>
    %cst_81 = arith.constant dense<0.000000e+00> : vector<26x128xf32>
    %189 = tpu.matmul %187, %188, %cst_81 {dimension_numbers = #tpu.dot_dimension_numbers<[1], [0], [0], [1], [0, 0, 1, 1], [], []>} : vector<26x36xf32>, vector<36x128xf32>, vector<26x128xf32> -> vector<26x128xf32>
    %190 = tpu.iota {dimensions = array<i32: 0>} : vector<128x8xi32>
    %191 = tpu.iota {dimensions = array<i32: 1>} : vector<128x8xi32>
    %c8_i32 = arith.constant 8 : i32
    %c0_i32_82 = arith.constant 0 : i32
    %192 = arith.cmpi eq, %c8_i32, %c0_i32_82 : i32
    %c1_i32_83 = arith.constant 1 : i32
    %193 = arith.select %192, %c1_i32_83, %c8_i32 : i32
    %194 = vector.broadcast %193 : i32 to vector<128x8xi32>
    %195 = arith.remsi %190, %194 : vector<128x8xi32>
    %c0_i32_84 = arith.constant 0 : i32
    %196 = vector.broadcast %c0_i32_84 : i32 to vector<128x8xi32>
    %197 = arith.cmpi ne, %195, %196 : vector<128x8xi32>
    %c0_i32_85 = arith.constant 0 : i32
    %198 = vector.broadcast %c0_i32_85 : i32 to vector<128x8xi32>
    %199 = arith.cmpi slt, %195, %198 : vector<128x8xi32>
    %c0_i32_86 = arith.constant 0 : i32
    %200 = arith.cmpi slt, %193, %c0_i32_86 : i32
    %201 = vector.broadcast %200 : i1 to vector<128x8xi1>
    %202 = vector.broadcast %201 : vector<128x8xi1> to vector<128x8xi1>
    %203 = arith.xori %199, %202 : vector<128x8xi1>
    %204 = arith.andi %203, %197 : vector<128x8xi1>
    %205 = vector.broadcast %193 : i32 to vector<128x8xi32>
    %206 = arith.addi %195, %205 : vector<128x8xi32>
    %207 = arith.select %204, %206, %195 : vector<128x8xi1>, vector<128x8xi32>
    %208 = arith.cmpi eq, %207, %191 : vector<128x8xi32>
    %c104_i32 = arith.constant 104 : i32
    %209 = vector.broadcast %c104_i32 : i32 to vector<128x8xi32>
    %210 = arith.cmpi slt, %190, %209 : vector<128x8xi32>
    %211 = arith.andi %208, %210 : vector<128x8xi1>
    %212 = arith.extui %211 : vector<128x8xi1> to vector<128x8xi32>
    %213 = arith.sitofp %212 : vector<128x8xi32> to vector<128x8xf32>
    %214 = tpu.iota {dimensions = array<i32: 1>} : vector<8x128xi32>
    %215 = tpu.iota {dimensions = array<i32: 0>} : vector<8x128xi32>
    %c8_i32_87 = arith.constant 8 : i32
    %c0_i32_88 = arith.constant 0 : i32
    %216 = arith.cmpi eq, %c8_i32_87, %c0_i32_88 : i32
    %c1_i32_89 = arith.constant 1 : i32
    %217 = arith.select %216, %c1_i32_89, %c8_i32_87 : i32
    %218 = vector.broadcast %217 : i32 to vector<8x128xi32>
    %219 = arith.remsi %214, %218 : vector<8x128xi32>
    %c0_i32_90 = arith.constant 0 : i32
    %220 = vector.broadcast %c0_i32_90 : i32 to vector<8x128xi32>
    %221 = arith.cmpi ne, %219, %220 : vector<8x128xi32>
    %c0_i32_91 = arith.constant 0 : i32
    %222 = vector.broadcast %c0_i32_91 : i32 to vector<8x128xi32>
    %223 = arith.cmpi slt, %219, %222 : vector<8x128xi32>
    %c0_i32_92 = arith.constant 0 : i32
    %224 = arith.cmpi slt, %217, %c0_i32_92 : i32
    %225 = vector.broadcast %224 : i1 to vector<8x128xi1>
    %226 = vector.broadcast %225 : vector<8x128xi1> to vector<8x128xi1>
    %227 = arith.xori %223, %226 : vector<8x128xi1>
    %228 = arith.andi %227, %221 : vector<8x128xi1>
    %229 = vector.broadcast %217 : i32 to vector<8x128xi32>
    %230 = arith.addi %219, %229 : vector<8x128xi32>
    %231 = arith.select %228, %230, %219 : vector<8x128xi1>, vector<8x128xi32>
    %232 = arith.cmpi eq, %231, %215 : vector<8x128xi32>
    %c104_i32_93 = arith.constant 104 : i32
    %233 = vector.broadcast %c104_i32_93 : i32 to vector<8x128xi32>
    %234 = arith.cmpi slt, %214, %233 : vector<8x128xi32>
    %235 = arith.andi %232, %234 : vector<8x128xi1>
    %236 = arith.extui %235 : vector<8x128xi1> to vector<8x128xi32>
    %237 = arith.sitofp %236 : vector<8x128xi32> to vector<8x128xf32>
    %cst_94 = arith.constant dense<0.000000e+00> : vector<128xf32>
    %238 = vector.multi_reduction <add>, %189, %cst_94 [0] : vector<26x128xf32> to vector<128xf32>
    %239 = vector.shape_cast %238 : vector<128xf32> to vector<1x128xf32>
    %240 = arith.mulf %189, %189 : vector<26x128xf32>
    %cst_95 = arith.constant dense<0.000000e+00> : vector<128xf32>
    %241 = vector.multi_reduction <add>, %240, %cst_95 [0] : vector<26x128xf32> to vector<128xf32>
    %242 = vector.shape_cast %241 : vector<128xf32> to vector<1x128xf32>
    %cst_96 = arith.constant dense<0.000000e+00> : vector<1x8xf32>
    %243 = tpu.matmul %239, %213, %cst_96 {dimension_numbers = #tpu.dot_dimension_numbers<[1], [0], [0], [1], [0, 0, 1, 1], [], []>} : vector<1x128xf32>, vector<128x8xf32>, vector<1x8xf32> -> vector<1x8xf32>
    %cst_97 = arith.constant 2.958580e-03 : f32
    %244 = vector.broadcast %cst_97 : f32 to vector<1x8xf32>
    %245 = arith.mulf %243, %244 : vector<1x8xf32>
    %cst_98 = arith.constant dense<0.000000e+00> : vector<1x8xf32>
    %246 = tpu.matmul %242, %213, %cst_98 {dimension_numbers = #tpu.dot_dimension_numbers<[1], [0], [0], [1], [0, 0, 1, 1], [], []>} : vector<1x128xf32>, vector<128x8xf32>, vector<1x8xf32> -> vector<1x8xf32>
    %cst_99 = arith.constant 2.958580e-03 : f32
    %247 = vector.broadcast %cst_99 : f32 to vector<1x8xf32>
    %248 = arith.mulf %246, %247 : vector<1x8xf32>
    %249 = arith.mulf %245, %245 : vector<1x8xf32>
    %250 = arith.subf %248, %249 : vector<1x8xf32>
    %cst_100 = arith.constant 9.99999974E-6 : f32
    %251 = vector.broadcast %cst_100 : f32 to vector<1x8xf32>
    %252 = arith.addf %250, %251 : vector<1x8xf32>
    %253 = math.rsqrt %252 : vector<1x8xf32>
    %c116 = arith.constant 116 : index
    %c0_101 = arith.constant 0 : index
    %254 = vector.load %arg2[%c116, %c0_101] : memref<120x128xf32, #tpu.memory_space<vmem>>, vector<1x8xf32>
    %c117 = arith.constant 117 : index
    %c0_102 = arith.constant 0 : index
    %255 = vector.load %arg2[%c117, %c0_102] : memref<120x128xf32, #tpu.memory_space<vmem>>, vector<1x8xf32>
    %256 = arith.mulf %253, %254 : vector<1x8xf32>
    %257 = arith.mulf %245, %256 : vector<1x8xf32>
    %258 = arith.subf %255, %257 : vector<1x8xf32>
    %cst_103 = arith.constant dense<0.000000e+00> : vector<1x128xf32>
    %259 = tpu.matmul %256, %237, %cst_103 {dimension_numbers = #tpu.dot_dimension_numbers<[1], [0], [0], [1], [0, 0, 1, 1], [], []>} : vector<1x8xf32>, vector<8x128xf32>, vector<1x128xf32> -> vector<1x128xf32>
    %cst_104 = arith.constant dense<0.000000e+00> : vector<1x128xf32>
    %260 = tpu.matmul %258, %237, %cst_104 {dimension_numbers = #tpu.dot_dimension_numbers<[1], [0], [0], [1], [0, 0, 1, 1], [], []>} : vector<1x8xf32>, vector<8x128xf32>, vector<1x128xf32> -> vector<1x128xf32>
    %261 = vector.broadcast %259 : vector<1x128xf32> to vector<26x128xf32>
    %262 = arith.mulf %189, %261 : vector<26x128xf32>
    %263 = vector.broadcast %260 : vector<1x128xf32> to vector<26x128xf32>
    %264 = arith.addf %262, %263 : vector<26x128xf32>
    %cst_105 = arith.constant 0.000000e+00 : f32
    %265 = vector.broadcast %cst_105 : f32 to vector<26x128xf32>
    %266 = arith.maximumf %264, %265 : vector<26x128xf32>
    %c384 = arith.constant 384 : index
    %c0_106 = arith.constant 0 : index
    %267 = vector.load %arg1[%c384, %c0_106] : memref<512x512xf32, #tpu.memory_space<vmem>>, vector<128x512xf32>
    %cst_107 = arith.constant dense<0.000000e+00> : vector<26x512xf32>
    %268 = tpu.matmul %266, %267, %cst_107 {dimension_numbers = #tpu.dot_dimension_numbers<[1], [0], [0], [1], [0, 0, 1, 1], [], []>} : vector<26x128xf32>, vector<128x512xf32>, vector<26x512xf32> -> vector<26x512xf32>
    %269 = vector.extract_strided_slice %268 {offsets = [0, 0], sizes = [26, 128], strides = [1, 1]} : vector<26x512xf32> to vector<26x128xf32>
    %c0_108 = arith.constant 0 : index
    %c0_109 = arith.constant 0 : index
    %270 = vector.load %arg4[%c0_108, %c0_109] : memref<104x128xf32, #tpu.memory_space<vmem>>, vector<26x128xf32>
    tpu.vector_store %arg4[%c0_108, %c0_109], %269 {strides = array<i32>} : memref<104x128xf32, #tpu.memory_space<vmem>>, vector<26x128xf32>,
    %271 = vector.extract_strided_slice %268 {offsets = [0, 128], sizes = [26, 128], strides = [1, 1]} : vector<26x512xf32> to vector<26x128xf32>
    %c26 = arith.constant 26 : index
    %c0_110 = arith.constant 0 : index
    %272 = vector.load %arg4[%c26, %c0_110] : memref<104x128xf32, #tpu.memory_space<vmem>>, vector<26x128xf32>
    tpu.vector_store %arg4[%c26, %c0_110], %271 {strides = array<i32>} : memref<104x128xf32, #tpu.memory_space<vmem>>, vector<26x128xf32>,
    %273 = vector.extract_strided_slice %268 {offsets = [0, 256], sizes = [26, 128], strides = [1, 1]} : vector<26x512xf32> to vector<26x128xf32>
    %c52 = arith.constant 52 : index
    %c0_111 = arith.constant 0 : index
    %274 = vector.load %arg4[%c52, %c0_111] : memref<104x128xf32, #tpu.memory_space<vmem>>, vector<26x128xf32>
    tpu.vector_store %arg4[%c52, %c0_111], %273 {strides = array<i32>} : memref<104x128xf32, #tpu.memory_space<vmem>>, vector<26x128xf32>,
    %275 = vector.extract_strided_slice %268 {offsets = [0, 384], sizes = [26, 128], strides = [1, 1]} : vector<26x512xf32> to vector<26x128xf32>
    %c78 = arith.constant 78 : index
    %c0_112 = arith.constant 0 : index
    %276 = vector.load %arg4[%c78, %c0_112] : memref<104x128xf32, #tpu.memory_space<vmem>>, vector<26x128xf32>
    tpu.vector_store %arg4[%c78, %c0_112], %275 {strides = array<i32>} : memref<104x128xf32, #tpu.memory_space<vmem>>, vector<26x128xf32>,
    %c56 = arith.constant 56 : index
    %c0_113 = arith.constant 0 : index
    %277 = vector.load %arg2[%c56, %c0_113] : memref<120x128xf32, #tpu.memory_space<vmem>>, vector<56x104xf32>
    %c0_114 = arith.constant 0 : index
    %c0_115 = arith.constant 0 : index
    %278 = vector.load %arg4[%c0_114, %c0_115] : memref<104x128xf32, #tpu.memory_space<vmem>>, vector<104x128xf32>
    %cst_116 = arith.constant dense<0.000000e+00> : vector<56x128xf32>
    %279 = tpu.matmul %277, %278, %cst_116 {dimension_numbers = #tpu.dot_dimension_numbers<[1], [0], [0], [1], [0, 0, 1, 1], [], []>} : vector<56x104xf32>, vector<104x128xf32>, vector<56x128xf32> -> vector<56x128xf32>
    %c118 = arith.constant 118 : index
    %c0_117 = arith.constant 0 : index
    %280 = vector.load %arg2[%c118, %c0_117] : memref<120x128xf32, #tpu.memory_space<vmem>>, vector<1x128xf32>
    %281 = vector.broadcast %280 : vector<1x128xf32> to vector<56x128xf32>
    %282 = arith.addf %279, %281 : vector<56x128xf32>
    %283 = math.tanh %282 : vector<56x128xf32>
    %c0_118 = arith.constant 0 : index
    %c0_119 = arith.constant 0 : index
    %284 = vector.load %arg3[%c0_118, %c0_119] : memref<56x128xf32, #tpu.memory_space<vmem>>, vector<56x128xf32>
    tpu.vector_store %arg3[%c0_118, %c0_119], %283 {strides = array<i32>} : memref<56x128xf32, #tpu.memory_space<vmem>>, vector<56x128xf32>,
    return
  }
}

</mosaic_0001>

<bundles_post_ra>
// kernel: tpu_custom_call.1
= control target key start
LH: loop header
LB: loop body
LE: loop exit
PB: predicated region body
PF: predicated region fallthrough
CT: control target
= control target key end

     0   :  { %8 = vsyncpa [#allocation4], 0  ;;  %s2886_s0 = inlined_call_operand.hbm [shape: f32[2,128], index: 0, kind: input, shape index: {}]   ;;  %s2887_s1 = inlined_call_operand.hbm [shape: f32[512,512], index: 1, kind: input, shape index: {}]   ;;  %s2888_s2 = inlined_call_operand.hbm [shape: f32[120,128], index: 2, kind: input, shape index: {}]   ;;  %s2889_s3 = inlined_call_operand.hbm [shape: f32[56,128], index: 3, kind: output, shape index: {}]  }
   0x1   :  { %9 = vsyncpa [#allocation7], 0  ;;  %s26_s14 = sshll.u32 %s2887_s1, 4  ;;  %s27_s14 = int_to_ptr.hbm [resolvable:$true] %s26_s14 }
   0x2   :  { %10 = vsyncpa [#allocation5], 0  ;;  %s2452_s15 = smov [#allocation6]   ;;  %s16_s19 = sshll.u32 %s2886_s0, 4  ;;  %s17_s19 = int_to_ptr.hbm [resolvable:$true] %s16_s19 }
   0x3   :  { %s28_s16 = sshll.u32 %s2452_s15, 4  ;;  %s2453_s20 = smov 512   ;;  %s29_s16 = int_to_ptr.vmem [resolvable:$true] %s28_s16 }
   0x4   :  { %s2454_s21 = smov 32   ;;  %s2455_s22 = smov [#allocation3]  }
   0x5   :  { %34 = dma.hbm_to_vmem [thread:$0]  %s27_s14, 32768, %s29_s16, [#allocation7], %s2453_s20, %s2453_s20, %s2454_s21  }
   0x6   :  { %s18_s23 = sshll.u32 %s2455_s22, 4  ;;  %s39_s26 = sshll.u32 %s2888_s2, 4  ;;  %s19_s23 = int_to_ptr.vmem [resolvable:$true] %s18_s23  ;;  %s40_s26 = int_to_ptr.hbm [resolvable:$true] %s39_s26 }
   0x7   :  { %21 = dma.hbm_to_vmem [thread:$0]  %s17_s19, 32, %s19_s23, [#allocation4]  }
   0x8   :  { %s2456_s1 = smov [#allocation8]   ;;  %s2457_s28 = smov 128  }
   0x9   :  { %s41_s27 = sshll.u32 %s2456_s1, 4  ;;  %s2458_s29 = smov 8   ;;  %s42_s27 = int_to_ptr.vmem [resolvable:$true] %s41_s27 }
   0xa   :  { %47 = dma.hbm_to_vmem [thread:$0]  %s40_s26, 1920, %s42_s27, [#allocation7], %s2457_s28, %s2457_s28, %s2458_s29  }
   0xb   :  { %2446 = dma.done.wait [#allocation4], 32  }
   0xc   :  { %2447 = vsyncadd [#allocation4], 4294967264 }
   0xd   :  { %2448 = dma.done.wait [#allocation7], 34688  }
   0xe   :  { %2449 = vsyncadd [#allocation7], 4294932608  ;;  %v108_v0 = vld [vmem:[#allocation6 + $0x1f0] sm:$0xff]  ;;  %v106_v2 = vld [vmem:[#allocation6 + $0x1e0] sm:$0xff]  ;;  %v202_v49 = vlaneseq  ;;  %vm178_vm11 = vcmask 1045504   ;;  %vm174_vm13 = vcmask 48128  }
   0xf   :  { %v105_v1 = vld [vmem:[#allocation6 + $0x1d0] sm:$0xff]  ;;  %149 = vmatpush.msra.mxu2 %v108_v0  ;;  %v107_v3 = vld [vmem:[#allocation6 + $0x1e8] sm:$0xff]  ;;  %109 = vmatpush.msra.mxu0 %v106_v2  ;;  %v103_v5 = vld [vmem:[#allocation6 + $0x1c0] sm:$0xff]  ;;  %v2459_v0 = vmov 1.0   ;;  %s2460_s0 = smov [#allocation9]   ;;  %s2152_s5 = sshll.u32 %s2889_s3, 4  ;;  %s2153_s5 = int_to_ptr.hbm [resolvable:$true] %s2152_s5 }
  0x10   :  { %v102_v4 = vld [vmem:[#allocation6 + $0x1b0] sm:$0xff]  ;;  %129 = vmatpush.msra.mxu1 %v107_v3  ;;  %v104_v6 = vld [vmem:[#allocation6 + $0x1c8] sm:$0xff]  ;;  %v100_v7 = vld [vmem:[#allocation6 + $0x1a0] sm:$0xff]  ;;  %v2493_v50 = vshrl.u32 %v202_v49, 7  ;;  %v2495_v51 = vand.u32 127, %v202_v49  ;;  %s2150_s2 = sshll.u32 %s2460_s0, 4  ;;  %s2151_s2 = int_to_ptr.vmem [resolvable:$true] %s2150_s2 }
  0x11   :  { %150 = vmatpush.msra.mxu2 %v105_v1  ;;  %v101_v8 = vld [vmem:[#allocation6 + $0x1a8] sm:$0xff]  ;;  %v99_v9 = vld [vmem:[#allocation6 + $0x190] sm:$0xff]  ;;  %110 = vmatpush.msra.mxu0 %v103_v5  ;;  %v97_v10 = vld [vmem:[#allocation6 + $0x180] sm:$0xff] }
  0x12   :  { %130 = vmatpush.msra.mxu1 %v104_v6  ;;  %v98_v11 = vld [vmem:[#allocation6 + $0x188] sm:$0xff]  ;;  %v96_v12 = vld [vmem:[#allocation6 + $0x170] sm:$0xff]  ;;  %v94_v13 = vld [vmem:[#allocation6 + $0x160] sm:$0xff]  ;;  %v2498_v52 = vadd.s32 88, %v2493_v50  ;;  %v2501_v53 = vadd.s32 80, %v2493_v50  ;;  %v2504_v54 = vadd.s32 72, %v2493_v50 }
  0x13   :  { %151 = vmatpush.msra.mxu2 %v102_v4  ;;  %111 = vmatpush.msra.mxu0 %v100_v7  ;;  %v95_v14 = vld [vmem:[#allocation6 + $0x168] sm:$0xff]  ;;  %v93_v15 = vld [vmem:[#allocation6 + $0x150] sm:$0xff]  ;;  %v91_v16 = vld [vmem:[#allocation6 + $0x140] sm:$0xff]  ;;  %v2507_v55 = vadd.s32 64, %v2493_v50  ;;  %v2513_v59 = vadd.s32 56, %v2493_v50  ;;  %v2527_v63 = vadd.s32 48, %v2493_v50 }
  0x14   :  { %131 = vmatpush.msra.mxu1 %v101_v8  ;;  %v92_v17 = vld [vmem:[#allocation6 + $0x148] sm:$0xff]  ;;  %v90_v18 = vld [vmem:[#allocation6 + $0x130] sm:$0xff]  ;;  %v88_v19 = vld [vmem:[#allocation6 + $0x120] sm:$0xff]  ;;  %v302_v56 = vand.u32 31, %v2498_v52  ;;  %v295_v57 = vand.u32 31, %v2501_v53  ;;  %v288_v58 = vand.u32 31, %v2504_v54 }
  0x15   :  { %152 = vmatpush.msra.mxu2 %v99_v9  ;;  %112 = vmatpush.msra.mxu0 %v97_v10  ;;  %v89_v20 = vld [vmem:[#allocation6 + $0x128] sm:$0xff]  ;;  %v87_v21 = vld [vmem:[#allocation6 + $0x110] sm:$0xff]  ;;  %v85_v22 = vld [vmem:[#allocation6 + $0x100] sm:$0xff]  ;;  %v281_v62 = vand.u32 31, %v2507_v55  ;;  %v274_v2 = vand.u32 31, %v2513_v59  ;;  %v2539_v3 = vadd.s32 40, %v2493_v50 }
  0x16   :  { %132 = vmatpush.msra.mxu1 %v98_v11  ;;  %v86_v23 = vld [vmem:[#allocation6 + $0x108] sm:$0xff]  ;;  %v84_v24 = vld [vmem:[#allocation6 + $0xf0] sm:$0xff]  ;;  %v82_v25 = vld [vmem:[#allocation6 + $0xe0] sm:$0xff]  ;;  %vm2516_vm0 = vcmp.eq.s32.totalorder %v302_v56, %v2495_v51  ;;  %vm2521_vm1 = vcmp.eq.s32.totalorder %v295_v57, %v2495_v51  ;;  %vm2533_vm2 = vcmp.eq.s32.totalorder %v288_v58, %v2495_v51  ;;  %v267_v5 = vand.u32 31, %v2527_v63 }
  0x17   :  { %153 = vmatpush.msra.mxu2 %v96_v12  ;;  %113 = vmatpush.msra.mxu0 %v94_v13  ;;  %v83_v26 = vld [vmem:[#allocation6 + $0xe8] sm:$0xff]  ;;  %v81_v27 = vld [vmem:[#allocation6 + $0xd0] sm:$0xff]  ;;  %v79_v28 = vld [vmem:[#allocation6 + $0xc0] sm:$0xff]  ;;  %vm2545_vm3 = vcmp.eq.s32.totalorder %v281_v62, %v2495_v51  ;;  %v2551_v6 = vadd.s32 32, %v2493_v50  ;;  %vm2557_vm4 = vcmp.eq.s32.totalorder %v274_v2, %v2495_v51  ;;  %v260_v8 = vand.u32 31, %v2539_v3 }
  0x18   :  { %133 = vmatpush.msra.mxu1 %v95_v14  ;;  %v80_v29 = vld [vmem:[#allocation6 + $0xc8] sm:$0xff]  ;;  %v78_v30 = vld [vmem:[#allocation6 + $0xb0] sm:$0xff]  ;;  %v76_v31 = vld [vmem:[#allocation6 + $0xa0] sm:$0xff]  ;;  %2184 = vmatpush.msk.msra.mxu3 %vm2516_vm0, %v2459_v0  ;;  %v2563_v9 = vadd.s32 24, %v2493_v50  ;;  %vm2569_vm5 = vcmp.eq.s32.totalorder %v267_v5, %v2495_v51  ;;  %v2575_v12 = vadd.s32 16, %v2493_v50  ;;  %vm509_vm15 = vcmp.lt.s32.totalorder %v2495_v51, 96 }
  0x19   :  { %154 = vmatpush.msra.mxu2 %v93_v15  ;;  %114 = vmatpush.msra.mxu0 %v91_v16  ;;  %v77_v32 = vld [vmem:[#allocation6 + $0xa8] sm:$0xff]  ;;  %v75_v33 = vld [vmem:[#allocation6 + $0x90] sm:$0xff]  ;;  %v73_v34 = vld [vmem:[#allocation6 + $0x80] sm:$0xff]  ;;  %v253_v11 = vand.u32 31, %v2551_v6  ;;  %vm2581_vm6 = vcmp.eq.s32.totalorder %v260_v8, %v2495_v51 }
  0x1a   :  { %134 = vmatpush.msra.mxu1 %v92_v17  ;;  %v74_v35 = vld [vmem:[#allocation6 + $0x88] sm:$0xff]  ;;  %v72_v36 = vld [vmem:[#allocation6 + $0x70] sm:$0xff]  ;;  %v70_v37 = vld [vmem:[#allocation6 + $0x60] sm:$0xff]  ;;  %2185 = vmatpush.msk.msra.mxu3 %vm2521_vm1, %v2459_v0  ;;  %v246_v16 = vand.u32 31, %v2563_v9  ;;  %v2587_v17 = vadd.s32 8, %v2493_v50 }
  0x1b   :  { %155 = vmatpush.msra.mxu2 %v90_v18  ;;  %115 = vmatpush.msra.mxu0 %v88_v19  ;;  %v71_v38 = vld [vmem:[#allocation6 + $0x68] sm:$0xff]  ;;  %v69_v39 = vld [vmem:[#allocation6 + $0x50] sm:$0xff]  ;;  %v67_v40 = vld [vmem:[#allocation6 + $0x40] sm:$0xff]  ;;  %vm2593_vm7 = vcmp.eq.s32.totalorder %v253_v11, %v2495_v51  ;;  %v239_v19 = vand.u32 31, %v2575_v12 }
  0x1c   :  { %135 = vmatpush.msra.mxu1 %v89_v20  ;;  %v68_v41 = vld [vmem:[#allocation6 + $0x48] sm:$0xff]  ;;  %v66_v42 = vld [vmem:[#allocation6 + $0x30] sm:$0xff]  ;;  %v64_v43 = vld [vmem:[#allocation6 + $0x20] sm:$0xff]  ;;  %2186 = vmatpush.msk.msra.mxu3 %vm2533_vm2, %v2459_v0  ;;  %vm2602_vm8 = vcmp.eq.s32.totalorder %v246_v16, %v2495_v51 }
  0x1d   :  { %156 = vmatpush.msra.mxu2 %v87_v21  ;;  %116 = vmatpush.msra.mxu0 %v85_v22  ;;  %v65_v44 = vld [vmem:[#allocation6 + $0x28] sm:$0xff]  ;;  %v63_v45 = vld [vmem:[#allocation6 + $0x10] sm:$0xff]  ;;  %v60_v46 = vld [vmem:[#allocation3] sm:$0x3]  ;;  %v232_v22 = vand.u32 31, %v2587_v17  ;;  %vm2611_vm9 = vcmp.eq.s32.totalorder %v239_v19, %v2495_v51 }
  0x1e   :  { %136 = vmatpush.msra.mxu1 %v86_v23  ;;  %v61_v47 = vld [vmem:[#allocation6] sm:$0xff]  ;;  %v62_v48 = vld [vmem:[#allocation6 + $0x8] sm:$0xff]  ;;  %2187 = vmatpush.msk.msra.mxu3 %vm2545_vm3, %v2459_v0  ;;  %v711_v60 = vld [vmem:[#allocation6 + $0x3f0] sm:$0xff] }
  0x1f   :  { %157 = vmatpush.msra.mxu2 %v84_v24  ;;  %117 = vmatpush.msra.mxu0 %v82_v25  ;;  %v225_v24 = vand.u32 31, %v2493_v50  ;;  %vm2620_vm10 = vcmp.eq.s32.totalorder %v232_v22, %v2495_v51  ;;  %v709_v58 = vld [vmem:[#allocation6 + $0x3e0] sm:$0xff]  ;;  %v712_v61 = vld [vmem:[#allocation6 + $0x3f8] sm:$0xff]  ;;  %v707_v2 = vld [vmem:[#allocation6 + $0x3d0] sm:$0xff] }
  0x20   :  { %137 = vmatpush.msra.mxu1 %v83_v26  ;;  %2188 = vmatpush.msk.msra.mxu3 %vm2557_vm4, %v2459_v0  ;;  %v705_v62 = vld [vmem:[#allocation6 + $0x3c0] sm:$0xff]  ;;  %v708_v4 = vld [vmem:[#allocation6 + $0x3d8] sm:$0xff]  ;;  %v703_v7 = vld [vmem:[#allocation6 + $0x3b0] sm:$0xff] }
  0x21   :  { %158 = vmatpush.msra.mxu2 %v81_v27  ;;  %118 = vmatpush.msra.mxu0 %v79_v28  ;;  %vm2628_vm12 = vcmp.eq.s32.totalorder %v225_v24, %v2495_v51  ;;  %v172_v27 = vld [vmem:[#allocation8] sm:$0x3f]  ;;  %v704_v8 = vld [vmem:[#allocation6 + $0x3b8] sm:$0xff]  ;;  %v699_v11 = vld [vmem:[#allocation6 + $0x390] sm:$0xff] }
  0x22   :  { %138 = vmatpush.msra.mxu1 %v80_v29  ;;  %2189 = vmatpush.msk.msra.mxu3 %vm2569_vm5, %v2459_v0  ;;  %v701_v5 = vld [vmem:[#allocation6 + $0x3a0] sm:$0xff]  ;;  %v695_v15 = vld [vmem:[#allocation6 + $0x370] sm:$0xff]  ;;  %v696_v16 = vld [vmem:[#allocation6 + $0x378] sm:$0xff] }
  0x23   :  { %159 = vmatpush.msra.mxu2 %v78_v30  ;;  %119 = vmatpush.msra.mxu0 %v76_v31  ;;  %v697_v10 = vld [vmem:[#allocation6 + $0x380] sm:$0xff]  ;;  %v691_v19 = vld [vmem:[#allocation6 + $0x350] sm:$0xff]  ;;  %v688_v25 = vld [vmem:[#allocation6 + $0x338] sm:$0xff] }
  0x24   :  { %139 = vmatpush.msra.mxu1 %v77_v32  ;;  %2190 = vmatpush.msk.msra.mxu3 %vm2581_vm6, %v2459_v0  ;;  %v689_v18 = vld [vmem:[#allocation6 + $0x340] sm:$0xff]  ;;  %v687_v23 = vld [vmem:[#allocation6 + $0x330] sm:$0xff] }
  0x25   :  { %160 = vmatpush.msra.mxu2 %v75_v33  ;;  %120 = vmatpush.msra.mxu0 %v73_v34  ;;  %v685_v22 = vld [vmem:[#allocation6 + $0x320] sm:$0xff] }
  0x26   :  { %140 = vmatpush.msra.mxu1 %v74_v35  ;;  %2191 = vmatpush.msk.msra.mxu3 %vm2593_vm7, %v2459_v0  ;;  %v681_v26 = vld [vmem:[#allocation6 + $0x300] sm:$0xff] }
  0x27   :  { %161 = vmatpush.msra.mxu2 %v72_v36  ;;  %121 = vmatpush.msra.mxu0 %v70_v37 }
  0x28   :  { %141 = vmatpush.msra.mxu1 %v71_v38  ;;  %2192 = vmatpush.msk.msra.mxu3 %vm2602_vm8, %v2459_v0 }
  0x29   :  { %162 = vmatpush.msra.mxu2 %v69_v39  ;;  %122 = vmatpush.msra.mxu0 %v67_v40 }
  0x2a   :  { %142 = vmatpush.msra.mxu1 %v68_v41  ;;  %2193 = vmatpush.msk.msra.mxu3 %vm2611_vm9, %v2459_v0 }
  0x2b   :  { %163 = vmatpush.msra.mxu2 %v66_v42  ;;  %123 = vmatpush.msra.mxu0 %v64_v43 }
  0x2c   :  { %143 = vmatpush.msra.mxu1 %v65_v44  ;;  %2194 = vmatpush.msk.msra.mxu3 %vm2620_vm10, %v2459_v0 }
  0x2d   :  { %164 = vmatpush.msra.mxu2 %v63_v45  ;;  %124 = vmatpush.msra.mxu0 %v61_v47  ;;  %v497_v45 = vand.u32 31, %v2495_v51 }
  0x2e   :  { %165 = vmatmul.f32.vlgmr.msra.gmra.mxu2 %v60_v46  ;;  %144 = vmatpush.msra.mxu1 %v62_v48 }
  0x2f   :  { %125 = vmatmul.f32.vlgmr.msra.gmra.mxu0 %v60_v46  ;;  %145 = vmatmul.f32.vlgmr.msra.gmra.mxu1 %v60_v46  ;;  %vm508_vm14 = vcmp.eq.s32.totalorder %v497_v45, %v2563_v9 }
  0x30   :  { %2195 = vmatpush.msk.msra.mxu3 %vm2628_vm12, %v2459_v0  ;;  %753 = vmatpush.msrb.mxu1 %v711_v60  ;;  %v674_v60 = vld [vmem:[#allocation6 + $0x2c8] sm:$0xff] }
  0x32   :  { %2196 = vmatpush.msk.msrb.mxu3 %vm2516_vm0, %v2459_v0  ;;  %vm513_vm0 = vmand %vm508_vm14, %vm509_vm15  ;;  %754 = vmatpush.msrb.mxu1 %v707_v2  ;;  %v670_v2 = vld [vmem:[#allocation6 + $0x2a8] sm:$0xff] }
  0x33   :  { %2208 = vmatpush.msk.msrb.mxu0 %vm513_vm0, %v2459_v0 }
  0x34   :  { %2197 = vmatpush.msk.msrb.mxu3 %vm2521_vm1, %v2459_v0  ;;  %vm507_vm1 = vcmp.eq.s32.totalorder %v497_v45, %v2575_v12  ;;  %755 = vmatpush.msrb.mxu1 %v703_v7  ;;  %v665_v7 = vld [vmem:[#allocation6 + $0x280] sm:$0xff] }
  0x36   :  { %2198 = vmatpush.msk.msrb.mxu3 %vm2533_vm2, %v2459_v0  ;;  %vm512_vm2 = vmand %vm507_vm1, %vm509_vm15  ;;  %756 = vmatpush.msrb.mxu1 %v699_v11  ;;  %v668_v11 = vld [vmem:[#allocation6 + $0x298] sm:$0xff] }
  0x37   :  { %2209 = vmatpush.msk.msrb.mxu0 %vm512_vm2, %v2459_v0 }
  0x38   :  { %2199 = vmatpush.msk.msrb.mxu3 %vm2545_vm3, %v2459_v0  ;;  %vm506_vm3 = vcmp.eq.s32.totalorder %v497_v45, %v2587_v17  ;;  %757 = vmatpush.msrb.mxu1 %v695_v15  ;;  %v663_v15 = vld [vmem:[#allocation6 + $0x270] sm:$0xff] }
  0x3a   :  { %2200 = vmatpush.msk.msrb.mxu3 %vm2557_vm4, %v2459_v0  ;;  %vm505_vm4 = vcmp.eq.s32.totalorder %v497_v45, %v2493_v50  ;;  %758 = vmatpush.msrb.mxu1 %v691_v19  ;;  %v690_v45 = vld [vmem:[#allocation6 + $0x348] sm:$0xff] }
  0x3b   :  { %v658_v19 = vld [vmem:[#allocation6 + $0x248] sm:$0xff] }
  0x3c   :  { %2201 = vmatpush.msk.msrb.mxu3 %vm2569_vm5, %v2459_v0  ;;  %vm511_vm5 = vmand %vm506_vm3, %vm509_vm15  ;;  %759 = vmatpush.msrb.mxu1 %v687_v23  ;;  %v654_v23 = vld [vmem:[#allocation6 + $0x228] sm:$0xff] }
  0x3d   :  { %2210 = vmatpush.msk.msrb.mxu0 %vm511_vm5, %v2459_v0 }
  0x3e   :  { %2202 = vmatpush.msk.msrb.mxu3 %vm2581_vm6, %v2459_v0  ;;  %vm510_vm6 = vmand %vm505_vm4, %vm509_vm15 }
  0x3f   :  { %2211 = vmatpush.msk.msrb.mxu0 %vm510_vm6, %v2459_v0 }
  0x40   :  { %2203 = vmatpush.msk.msrb.mxu3 %vm2593_vm7, %v2459_v0 }
  0x41   :  { %2213 = vmatpush.msk.msra.mxu0 %vm513_vm0, %v2459_v0 }
  0x42   :  { %2204 = vmatpush.msk.msrb.mxu3 %vm2602_vm8, %v2459_v0 }
  0x43   :  { %2214 = vmatpush.msk.msra.mxu0 %vm512_vm2, %v2459_v0 }
  0x44   :  { %2205 = vmatpush.msk.msrb.mxu3 %vm2611_vm9, %v2459_v0 }
  0x45   :  { %2215 = vmatpush.msk.msra.mxu0 %vm511_vm5, %v2459_v0 }
  0x46   :  { %2206 = vmatpush.msk.msrb.mxu3 %vm2620_vm10, %v2459_v0  ;;  %vm597_vm10 = vcmask 261120  }
  0x47   :  { %2216 = vmatpush.msk.msra.mxu0 %vm510_vm6, %v2459_v0 }
  0x48   :  { %2207 = vmatpush.msk.msrb.mxu3 %vm2628_vm12, %v2459_v0 }
  0xac   :  { %v126_v13 = vpop.f32.mrf.mxu0  ;;  %v146_v14 = vpop.f32.mrf.mxu1 }
  0xad   :  { %169 = vst [vmem:[#allocation2] sm:$0x3] %v126_v13  ;;  %v700_v13 = vld [vmem:[#allocation6 + $0x398] sm:$0xff] }
  0xae   :  { %170 = vst [vmem:[#allocation2 + $0x2] sm:$0x3] %v146_v14  ;;  %v693_v14 = vld [vmem:[#allocation6 + $0x360] sm:$0xff] }
  0xb1   :  { %v166_v20 = vpop.f32.mrf.mxu2 }
  0xb2   :  { %171 = vst [vmem:[#allocation2 + $0x4] sm:$0x3] %v166_v20  ;;  %v692_v20 = vld [vmem:[#allocation6 + $0x358] sm:$0xff] }
  0xb9   :  { %v173_v28 = vld [vmem:[#allocation2] sm:$0x3f] }
  0xba   :  { %2166 = vmatpush.msk.msrb.mxu2 %vm178_vm11, %v173_v28 }
  0xbb   :  { %2167 = vmatmul.msk.f32.vlgmr.msrb.gmra.mxu2 %vm174_vm13, %v172_v27  ;;  %v683_v27 = vld [vmem:[#allocation6 + $0x310] sm:$0xff] }
  0xbc   :  { %713 = vmatpush.msra.mxu2 %v709_v58  ;;  %760 = vmatpush.msrb.mxu1 %v683_v27  ;;  %v673_v58 = vld [vmem:[#allocation6 + $0x2c0] sm:$0xff]  ;;  %v650_v27 = vld [vmem:[#allocation6 + $0x208] sm:$0xff] }
  0xbe   :  { %714 = vmatpush.msra.mxu2 %v705_v62  ;;  %v676_v62 = vld [vmem:[#allocation6 + $0x2d8] sm:$0xff] }
  0xc0   :  { %715 = vmatpush.msra.mxu2 %v701_v5  ;;  %v672_v5 = vld [vmem:[#allocation6 + $0x2b8] sm:$0xff] }
  0xc2   :  { %716 = vmatpush.msra.mxu2 %v697_v10  ;;  %v667_v10 = vld [vmem:[#allocation6 + $0x290] sm:$0xff] }
  0xc4   :  { %717 = vmatpush.msra.mxu2 %v693_v14  ;;  %v662_v14 = vld [vmem:[#allocation6 + $0x268] sm:$0xff] }
  0xc6   :  { %718 = vmatpush.msra.mxu2 %v689_v18  ;;  %v657_v18 = vld [vmem:[#allocation6 + $0x240] sm:$0xff] }
  0xc8   :  { %719 = vmatpush.msra.mxu2 %v685_v22  ;;  %v653_v22 = vld [vmem:[#allocation6 + $0x220] sm:$0xff] }
  0xca   :  { %720 = vmatpush.msra.mxu2 %v681_v26  ;;  %v649_v26 = vld [vmem:[#allocation6 + $0x200] sm:$0xff] }
 0x13e   :  { %v2675_v29 = vpop.f32.mrf.mxu2 }
 0x13f   :  { %v522_v30 = vsel %vm178_vm11, %v2675_v29, 0.0  ;;  %v529_v31 = vmul.f32 %v2675_v29, %v2675_v29 }
 0x140   :  { %v523_v32 = vrot.slane %v522_v30, 4 }
 0x141   :  { %v530_v33 = vsel %vm178_vm11, %v529_v31, 0.0  ;;  %vm802_vm11 = vcmask 195584  }
 0x142   :  { %v524_v34 = vadd.f32 %v523_v32, %v522_v30  ;;  %v531_v35 = vrot.slane %v530_v33, 4  ;;  %v684_v30 = vld [vmem:[#allocation6 + $0x318] sm:$0xff] }
 0x144   :  { %v532_v36 = vadd.f32 %v531_v35, %v530_v33  ;;  %v525_v37 = vrot.slane %v524_v34, 2 }
 0x146   :  { %v526_v38 = vadd.f32 %v525_v37, %v524_v34  ;;  %v533_v39 = vrot.slane %v532_v36, 2  ;;  %v592_v34 = vld [vmem:[#allocation8 + $0x70] sm:$0x1]  ;;  %v710_v37 = vld [vmem:[#allocation6 + $0x3e8] sm:$0xff] }
 0x148   :  { %v527_v40 = vrot.slane %v526_v38, 1  ;;  %v534_v42 = vadd.f32 %v533_v39, %v532_v36 }
 0x14a   :  { %v528_v41 = vadd.f32 %v527_v40, %v526_v38  ;;  %v535_v43 = vrot.slane %v534_v42, 1  ;;  %v706_v38 = vld [vmem:[#allocation6 + $0x3c8] sm:$0xff] }
 0x14b   :  { %v702_v40 = vld [vmem:[#allocation6 + $0x3a8] sm:$0xff] }
 0x14c   :  { %553 = vmatmul.f32.vlgmr.msra.gmra.mxu3 %v528_v41  ;;  %v536_v44 = vadd.f32 %v535_v43, %v534_v42  ;;  %v593_v41 = vld [vmem:[#allocation8 + $0x71] sm:$0x1]  ;;  %v698_v42 = vld [vmem:[#allocation6 + $0x388] sm:$0xff] }
 0x14d   :  { %773 = vmatpush.msra.mxu3 %v712_v61  ;;  %v675_v61 = vld [vmem:[#allocation6 + $0x2d0] sm:$0xff] }
 0x14f   :  { %774 = vmatpush.msra.mxu3 %v708_v4  ;;  %v671_v4 = vld [vmem:[#allocation6 + $0x2b0] sm:$0xff] }
 0x151   :  { %775 = vmatpush.msra.mxu3 %v704_v8  ;;  %v666_v8 = vld [vmem:[#allocation6 + $0x288] sm:$0xff] }
 0x153   :  { %776 = vmatpush.msra.mxu3 %v700_v13  ;;  %v661_v13 = vld [vmem:[#allocation6 + $0x260] sm:$0xff] }
 0x154   :  { %574 = vmatmul.f32.vlgmr.msrb.gmra.mxu3 %v536_v44  ;;  %v694_v44 = vld [vmem:[#allocation6 + $0x368] sm:$0xff] }
 0x155   :  { %777 = vmatpush.msra.mxu3 %v696_v16  ;;  %v664_v16 = vld [vmem:[#allocation6 + $0x278] sm:$0xff] }
 0x157   :  { %778 = vmatpush.msra.mxu3 %v692_v20  ;;  %v659_v20 = vld [vmem:[#allocation6 + $0x250] sm:$0xff] }
 0x159   :  { %779 = vmatpush.msra.mxu3 %v688_v25  ;;  %v656_v25 = vld [vmem:[#allocation6 + $0x238] sm:$0xff] }
 0x15b   :  { %780 = vmatpush.msra.mxu3 %v684_v30  ;;  %v652_v30 = vld [vmem:[#allocation6 + $0x218] sm:$0xff] }
 0x1cf   :  { %v554_v46 = vpop.f32.mrf.mxu3 }
 0x1d0   :  { %v2701_v47 = vmul.f32 0.055555556, %v554_v46  ;;  %v686_v46 = vld [vmem:[#allocation6 + $0x328] sm:$0xff] }
 0x1d2   :  { %v579_v49 = vmul.f32 %v2701_v47, %v2701_v47 }
 0x1d7   :  { %v575_v48 = vpop.f32.mrf.mxu3 }
 0x1d8   :  { %v578_v56 = vmul.f32 0.055555556, %v575_v48  ;;  %v682_v48 = vld [vmem:[#allocation6 + $0x308] sm:$0xff] }
 0x1da   :  { %v580_v57 = vsub.f32 %v578_v56, %v579_v49  ;;  %v677_v49 = vld [vmem:[#allocation6 + $0x2e0] sm:$0xff]  ;;  %v678_v56 = vld [vmem:[#allocation6 + $0x2e8] sm:$0xff] }
 0x1db   :  { %721 = vmatpush.msra.mxu2 %v677_v49  ;;  %v899_v49 = vand.u32 15, %v2504_v54 }
 0x1dc   :  { %v581_v1 = vadd.f32 1e-05, %v580_v57  ;;  %v679_v57 = vld [vmem:[#allocation6 + $0x2f0] sm:$0xff] }
 0x1dd   :  { %761 = vmatpush.msrb.mxu1 %v679_v57  ;;  %722 = vmatpush.msra.mxu2 %v673_v58  ;;  %vm1033_vm14 = vcmp.eq.s32.totalorder %v899_v49, %v2495_v51  ;;  %v885_v57 = vand.u32 15, %v2513_v59  ;;  %v871_v58 = vand.u32 15, %v2539_v3  ;;  %v1275_v49 = vld [vmem:[#allocation6 + $0x560] sm:$0xff] }
 0x1de   :  { %2330 = vrsqrt.f32 %v581_v1  ;;  %vm588_vm8 = vweird.f32 %v581_v1 }
 0x1df   :  { %762 = vmatpush.msrb.mxu1 %v675_v61  ;;  %vm1031_vm1 = vcmp.eq.s32.totalorder %v885_v57, %v2495_v51  ;;  %vm1029_vm3 = vcmp.eq.s32.totalorder %v871_v58, %v2495_v51  ;;  %v857_v61 = vand.u32 15, %v2563_v9  ;;  %v1277_v57 = vld [vmem:[#allocation6 + $0x570] sm:$0xff]  ;;  %v1273_v58 = vld [vmem:[#allocation6 + $0x548] sm:$0xff] }
 0x1e1   :  { %763 = vmatpush.msrb.mxu1 %v671_v4  ;;  %vm1027_vm5 = vcmp.eq.s32.totalorder %v857_v61, %v2495_v51  ;;  %v1269_v61 = vld [vmem:[#allocation6 + $0x520] sm:$0xff] }
 0x1e3   :  { %764 = vmatpush.msrb.mxu1 %v667_v10 }
 0x1e4   :  { %v2331_v21 = vpop.eup %2330 }
 0x1e5   :  { %v583_v24 = vmul.f32 %v2331_v21, %v581_v1  ;;  %vm589_vm7 = vweird.f32 %v2331_v21  ;;  %v669_v1 = vld [vmem:[#allocation6 + $0x2a0] sm:$0xff]  ;;  %765 = vmatpush.msrb.mxu1 %v663_v15 }
 0x1e6   :  { %vm590_vm9 = vmor %vm588_vm8, %vm589_vm7  ;;  %723 = vmatpush.msra.mxu2 %v669_v1  ;;  %v843_v1 = vand.u32 15, %v2587_v17 }
 0x1e7   :  { %v584_v28 = vmul.f32 %v2331_v21, %v583_v24  ;;  %766 = vmatpush.msrb.mxu1 %v659_v20  ;;  %v655_v24 = vld [vmem:[#allocation6 + $0x230] sm:$0xff] }
 0x1e8   :  { %724 = vmatpush.msra.mxu2 %v665_v7  ;;  %vm1025_vm7 = vcmp.eq.s32.totalorder %v843_v1, %v2495_v51  ;;  %v1271_v1 = vld [vmem:[#allocation6 + $0x530] sm:$0xff] }
 0x1e9   :  { %v585_v31 = vmul.f32 0.5, %v584_v28  ;;  %767 = vmatpush.msrb.mxu1 %v655_v24  ;;  %v651_v28 = vld [vmem:[#allocation6 + $0x210] sm:$0xff] }
 0x1ea   :  { %725 = vmatpush.msra.mxu2 %v661_v13 }
 0x1eb   :  { %v586_v32 = vsub.f32 1.5, %v585_v31  ;;  %768 = vmatpush.msrb.mxu1 %v651_v28  ;;  %v1092_v28 = vand.u32 15, %v2495_v51 }
 0x1ec   :  { %726 = vmatpush.msra.mxu2 %v657_v18 }
 0x1ed   :  { %v587_v33 = vmul.f32 %v2331_v21, %v586_v32 }
 0x1ee   :  { %727 = vmatpush.msra.mxu2 %v653_v22 }
 0x1ef   :  { %v591_v35 = vsel %vm590_vm9, %v2331_v21, %v587_v33  ;;  %v660_v21 = vld [vmem:[#allocation6 + $0x258] sm:$0xff]  ;;  %vm1108_vm9 = vcmask 1043456  }
 0x1f0   :  { %v594_v36 = vmul.f32 %v592_v34, %v591_v35  ;;  %728 = vmatpush.msra.mxu2 %v649_v26 }
 0x1f2   :  { %2212 = vmatmul.msk.f32.vlgmr.msrb.gmra.mxu0 %vm597_vm10, %v594_v36  ;;  %v595_v39 = vmul.f32 %v594_v36, %v2701_v47  ;;  %v680_v47 = vld [vmem:[#allocation6 + $0x2f8] sm:$0xff] }
 0x1f3   :  { %733 = vmatpush.msrb.mxu0 %v710_v37  ;;  %781 = vmatpush.msra.mxu3 %v680_v47  ;;  %v878_v47 = vand.u32 15, %v2527_v63 }
 0x1f4   :  { %v596_v43 = vsub.f32 %v593_v41, %v595_v39 }
 0x1f5   :  { %734 = vmatpush.msrb.mxu0 %v706_v38  ;;  %782 = vmatpush.msra.mxu3 %v676_v62  ;;  %vm1030_vm2 = vcmp.eq.s32.totalorder %v878_v47, %v2495_v51  ;;  %v850_v62 = vand.u32 15, %v2575_v12  ;;  %v1272_v47 = vld [vmem:[#allocation6 + $0x540] sm:$0xff] }
 0x1f7   :  { %735 = vmatpush.msrb.mxu0 %v702_v40  ;;  %783 = vmatpush.msra.mxu3 %v672_v5  ;;  %vm1026_vm6 = vcmp.eq.s32.totalorder %v850_v62, %v2495_v51  ;;  %v1270_v62 = vld [vmem:[#allocation6 + $0x528] sm:$0xff] }
 0x1f9   :  { %736 = vmatpush.msrb.mxu0 %v698_v42  ;;  %784 = vmatpush.msra.mxu3 %v668_v11 }
 0x1fa   :  { %2217 = vmatmul.msk.f32.vlgmr.msra.gmra.mxu0 %vm597_vm10, %v596_v43  ;;  %vm1101_vm10 = vcmp.eq.s32.totalorder %v1092_v28, %v2587_v17 }
 0x1fb   :  { %737 = vmatpush.msrb.mxu0 %v694_v44  ;;  %785 = vmatpush.msra.mxu3 %v664_v16 }
 0x1fd   :  { %738 = vmatpush.msrb.mxu0 %v690_v45  ;;  %786 = vmatpush.msra.mxu3 %v660_v21  ;;  %v798_v45 = vld [vmem:[#allocation8 + $0x10] sm:$0xf] }
 0x1ff   :  { %739 = vmatpush.msrb.mxu0 %v686_v46  ;;  %787 = vmatpush.msra.mxu3 %v656_v25  ;;  %v913_v46 = vand.u32 15, %v2498_v52 }
 0x201   :  { %740 = vmatpush.msrb.mxu0 %v682_v48  ;;  %788 = vmatpush.msra.mxu3 %v652_v30  ;;  %vm1035_vm12 = vcmp.eq.s32.totalorder %v913_v46, %v2495_v51  ;;  %v906_v48 = vand.u32 15, %v2501_v53  ;;  %v1280_v46 = vld [vmem:[#allocation6 + $0x590] sm:$0xff] }
 0x202   :  { %2246 = vmatpush.msk.msra.mxu1 %vm1035_vm12, %v2459_v0 }
 0x203   :  { %741 = vmatpush.msrb.mxu0 %v678_v56  ;;  %v892_v56 = vand.u32 15, %v2507_v55  ;;  %vm1034_vm13 = vcmp.eq.s32.totalorder %v906_v48, %v2495_v51 }
 0x204   :  { %2247 = vmatpush.msk.msra.mxu1 %vm1034_vm13, %v2459_v0 }
 0x205   :  { %742 = vmatpush.msrb.mxu0 %v674_v60  ;;  %vm1032_vm0 = vcmp.eq.s32.totalorder %v892_v56, %v2495_v51  ;;  %v864_v60 = vand.u32 15, %v2551_v6  ;;  %v1276_v56 = vld [vmem:[#allocation6 + $0x568] sm:$0xff] }
 0x206   :  { %2248 = vmatpush.msk.msra.mxu1 %vm1033_vm14, %v2459_v0 }
 0x207   :  { %743 = vmatpush.msrb.mxu0 %v670_v2  ;;  %vm1028_vm4 = vcmp.eq.s32.totalorder %v864_v60, %v2495_v51  ;;  %v836_v2 = vand.u32 15, %v2493_v50  ;;  %v1274_v60 = vld [vmem:[#allocation6 + $0x550] sm:$0xff] }
 0x208   :  { %2249 = vmatpush.msk.msra.mxu1 %vm1032_vm0, %v2459_v0 }
 0x209   :  { %744 = vmatpush.msrb.mxu0 %v666_v8  ;;  %vm1024_vm8 = vcmp.eq.s32.totalorder %v836_v2, %v2495_v51  ;;  %v1266_v2 = vld [vmem:[#allocation6 + $0x500] sm:$0xff] }
 0x20a   :  { %2250 = vmatpush.msk.msra.mxu1 %vm1031_vm1, %v2459_v0 }
 0x20b   :  { %745 = vmatpush.msrb.mxu0 %v662_v14 }
 0x20c   :  { %2251 = vmatpush.msk.msra.mxu1 %vm1030_vm2, %v2459_v0 }
 0x20d   :  { %746 = vmatpush.msrb.mxu0 %v658_v19 }
 0x20e   :  { %2252 = vmatpush.msk.msra.mxu1 %vm1029_vm3, %v2459_v0 }
 0x20f   :  { %747 = vmatpush.msrb.mxu0 %v654_v23 }
 0x210   :  { %2253 = vmatpush.msk.msra.mxu1 %vm1028_vm4, %v2459_v0 }
 0x211   :  { %748 = vmatpush.msrb.mxu0 %v650_v27 }
 0x212   :  { %2254 = vmatpush.msk.msra.mxu1 %vm1027_vm5, %v2459_v0 }
 0x213   :  { %2234 = vmatpush.msk.msra.mxu0 %vm1035_vm12, %v2459_v0  ;;  %vm1100_vm12 = vcmp.eq.s32.totalorder %v1092_v28, %v2493_v50 }
 0x214   :  { %2255 = vmatpush.msk.msra.mxu1 %vm1026_vm6, %v2459_v0 }
 0x215   :  { %2235 = vmatpush.msk.msra.mxu0 %vm1034_vm13, %v2459_v0  ;;  %vm1102_vm13 = vmand %vm1100_vm12, %vm509_vm15 }
 0x216   :  { %2256 = vmatpush.msk.msra.mxu1 %vm1025_vm7, %v2459_v0 }
 0x217   :  { %2236 = vmatpush.msk.msra.mxu0 %vm1033_vm14, %v2459_v0 }
 0x218   :  { %2257 = vmatpush.msk.msra.mxu1 %vm1024_vm8, %v2459_v0 }
 0x219   :  { %2237 = vmatpush.msk.msra.mxu0 %vm1032_vm0, %v2459_v0 }
 0x21b   :  { %2238 = vmatpush.msk.msra.mxu0 %vm1031_vm1, %v2459_v0  ;;  %vm1187_vm1 = vcmask 130048  }
 0x21d   :  { %2239 = vmatpush.msk.msra.mxu0 %vm1030_vm2, %v2459_v0  ;;  %vm1374_vm2 = vcmask 293888  }
 0x21f   :  { %2240 = vmatpush.msk.msra.mxu0 %vm1029_vm3, %v2459_v0 }
 0x221   :  { %2241 = vmatpush.msk.msra.mxu0 %vm1028_vm4, %v2459_v0 }
 0x223   :  { %2242 = vmatpush.msk.msra.mxu0 %vm1027_vm5, %v2459_v0 }
 0x225   :  { %2243 = vmatpush.msk.msra.mxu0 %vm1026_vm6, %v2459_v0 }
 0x227   :  { %2244 = vmatpush.msk.msra.mxu0 %vm1025_vm7, %v2459_v0 }
 0x229   :  { %2245 = vmatpush.msk.msra.mxu0 %vm1024_vm8, %v2459_v0 }
 0x26f   :  { %v618_v31 = vpop.f32.mrf.mxu0 }
 0x270   :  { %v644_v32 = vperm.slane %v618_v31, 0 }
 0x272   :  { %v645_v34 = vmul.f32 %v644_v32, %v2675_v29  ;;  %v797_v29 = vld [vmem:[#allocation8 + $0x8] sm:$0xff]  ;;  %v1287_v32 = vld [vmem:[#allocation6 + $0x5e0] sm:$0xff] }
 0x277   :  { %v641_v33 = vpop.f32.mrf.mxu0 }
 0x278   :  { %v646_v35 = vperm.slane %v641_v33, 0  ;;  %v1288_v33 = vld [vmem:[#allocation6 + $0x5e8] sm:$0xff] }
 0x27a   :  { %v647_v36 = vadd.f32 %v646_v35, %v645_v34  ;;  %v1289_v34 = vld [vmem:[#allocation6 + $0x5f0] sm:$0xff] }
 0x27c   :  { %v648_v37 = vmax.f32 %v647_v36, 0.0  ;;  %v1284_v36 = vld [vmem:[#allocation6 + $0x5c0] sm:$0xff] }
 0x27e   :  { %729 = vmatmul.f32.vlgmr.msra.gmra.mxu2 %v648_v37  ;;  %749 = vmatmul.f32.vlgmr.msrb.gmra.mxu0 %v648_v37 }
 0x27f   :  { %769 = vmatmul.f32.vlgmr.msrb.gmra.mxu1 %v648_v37  ;;  %789 = vmatmul.f32.vlgmr.msra.gmra.mxu3 %v648_v37  ;;  %v1285_v37 = vld [vmem:[#allocation6 + $0x5c8] sm:$0xff] }
 0x280   :  { %1336 = vmatpush.msrb.mxu0 %v1289_v34  ;;  %v1259_v34 = vld [vmem:[#allocation6 + $0x4b0] sm:$0xff] }
 0x2fb   :  { %v750_v38 = vpop.f32.mrf.mxu0 }
 0x2fc   :  { %794 = vst [vmem:[#allocation2 + $0x6] sm:$0x3f] %v750_v38  ;;  %v770_v39 = vpop.f32.mrf.mxu1  ;;  %v1286_v38 = vld [vmem:[#allocation6 + $0x5d0] sm:$0xff] }
 0x2fd   :  { %795 = vst [vmem:[#allocation2 + $0xc] sm:$0x3f] %v770_v39  ;;  %1337 = vmatpush.msrb.mxu0 %v1286_v38  ;;  %v1251_v38 = vld [vmem:[#allocation6 + $0x460] sm:$0xff] }
 0x301   :  { %v730_v40 = vpop.f32.mrf.mxu2 }
 0x302   :  { %793 = vst [vmem:[#allocation2] sm:$0x3f] %v730_v40  ;;  %v790_v41 = vpop.f32.mrf.mxu3 }
 0x303   :  { %796 = vst [vmem:[#allocation2 + $0x12] sm:$0x3f] %v790_v41  ;;  %v1281_v41 = vld [vmem:[#allocation6 + $0x5a0] sm:$0xff] }
 0x304   :  { %v800_v43 = vld [vmem:[#allocation2 + $0x8] sm:$0xff] }
 0x309   :  { %v799_v44 = vld [vmem:[#allocation2] sm:$0xff] }
 0x30a   :  { %v801_v42 = vld [vmem:[#allocation2 + $0x10] sm:$0xff] }
 0x30b   :  { %822 = vmatpush.msrb.mxu2 %v801_v42  ;;  %v1282_v42 = vld [vmem:[#allocation6 + $0x5a8] sm:$0xff] }
 0x30d   :  { %823 = vmatpush.msrb.mxu2 %v800_v43  ;;  %v1283_v43 = vld [vmem:[#allocation6 + $0x5b0] sm:$0xff] }
 0x30e   :  { %1338 = vmatpush.msrb.mxu0 %v1283_v43  ;;  %v1245_v43 = vld [vmem:[#allocation6 + $0x420] sm:$0xff] }
 0x30f   :  { %824 = vmatpush.msrb.mxu2 %v799_v44  ;;  %v1278_v44 = vld [vmem:[#allocation6 + $0x580] sm:$0xff] }
 0x310   :  { %2218 = vmatmul.msk.f32.vlgmr.msrb.gmra.mxu2 %vm802_vm11, %v797_v29  ;;  %1339 = vmatpush.msrb.mxu0 %v1280_v46  ;;  %v1243_v46 = vld [vmem:[#allocation6 + $0x408] sm:$0xff] }
 0x312   :  { %1340 = vmatpush.msrb.mxu0 %v1277_v57 }
 0x314   :  { %1341 = vmatpush.msrb.mxu0 %v1274_v60 }
 0x316   :  { %1342 = vmatpush.msrb.mxu0 %v1271_v1 }
 0x318   :  { %2219 = vmatmul.msk.f32.gmra.mxu2 %vm802_vm11, %v798_v45  ;;  %vm1103_vm11 = vmand %vm1101_vm10, %vm509_vm15  ;;  %v1279_v45 = vld [vmem:[#allocation6 + $0x588] sm:$0xff] }
 0x319   :  { %2258 = vmatpush.msk.msra.mxu2 %vm1103_vm11, %v2459_v0  ;;  %2261 = vmatpush.msk.msrb.mxu3 %vm1103_vm11, %v2459_v0 }
 0x31b   :  { %2259 = vmatpush.msk.msra.mxu2 %vm1102_vm13, %v2459_v0  ;;  %2262 = vmatpush.msk.msrb.mxu3 %vm1102_vm13, %v2459_v0 }
 0x31d   :  { %1290 = vmatpush.msrb.mxu2 %v1287_v32  ;;  %1313 = vmatpush.msra.mxu3 %v1288_v33  ;;  %v1257_v32 = vld [vmem:[#allocation6 + $0x4a0] sm:$0xff]  ;;  %v1258_v33 = vld [vmem:[#allocation6 + $0x4a8] sm:$0xff] }
 0x31f   :  { %1291 = vmatpush.msrb.mxu2 %v1284_v36  ;;  %1314 = vmatpush.msra.mxu3 %v1285_v37  ;;  %v1255_v36 = vld [vmem:[#allocation6 + $0x488] sm:$0xff]  ;;  %v1256_v37 = vld [vmem:[#allocation6 + $0x490] sm:$0xff] }
 0x321   :  { %1292 = vmatpush.msrb.mxu2 %v1281_v41  ;;  %1315 = vmatpush.msra.mxu3 %v1282_v42  ;;  %v1249_v41 = vld [vmem:[#allocation6 + $0x448] sm:$0xff]  ;;  %v1250_v42 = vld [vmem:[#allocation6 + $0x450] sm:$0xff] }
 0x323   :  { %1293 = vmatpush.msrb.mxu2 %v1278_v44  ;;  %1316 = vmatpush.msra.mxu3 %v1279_v45  ;;  %v1247_v44 = vld [vmem:[#allocation6 + $0x430] sm:$0xff]  ;;  %v1242_v45 = vld [vmem:[#allocation6 + $0x400] sm:$0xff] }
 0x325   :  { %1294 = vmatpush.msrb.mxu2 %v1275_v49  ;;  %1317 = vmatpush.msra.mxu3 %v1276_v56 }
 0x327   :  { %1295 = vmatpush.msrb.mxu2 %v1272_v47  ;;  %1318 = vmatpush.msra.mxu3 %v1273_v58 }
 0x329   :  { %1296 = vmatpush.msrb.mxu2 %v1269_v61  ;;  %1319 = vmatpush.msra.mxu3 %v1270_v62 }
 0x32b   :  { %1297 = vmatpush.msrb.mxu2 %v1266_v2 }
 0x393   :  { %v2758_v4 = vpop.f32.mrf.mxu2 }
 0x394   :  { %v1117_v10 = vmul.f32 %v2758_v4, %v2758_v4 }
 0x39b   :  { %v2760_v5 = vpop.f32.mrf.mxu2 }
 0x39c   :  { %v1109_v7 = vsel %vm1108_vm9, %v2760_v5, 0.0  ;;  %v1118_v8 = vmul.f32 %v2760_v5, %v2760_v5 }
 0x39d   :  { %v1110_v11 = vadd.f32 %v1109_v7, %v2758_v4  ;;  %v1267_v7 = vld [vmem:[#allocation6 + $0x508] sm:$0xff] }
 0x39e   :  { %v1119_v13 = vsel %vm1108_vm9, %v1118_v8, 0.0  ;;  %v1268_v8 = vld [vmem:[#allocation6 + $0x510] sm:$0xff]  ;;  %1320 = vmatpush.msra.mxu3 %v1267_v7 }
 0x39f   :  { %v1111_v14 = vrot.slane %v1110_v11, 4  ;;  %v1120_v15 = vadd.f32 %v1119_v13, %v1117_v10  ;;  %v1264_v13 = vld [vmem:[#allocation6 + $0x4e8] sm:$0xff]  ;;  %1343 = vmatpush.msrb.mxu0 %v1268_v8 }
 0x3a0   :  { %1321 = vmatpush.msra.mxu3 %v1264_v13 }
 0x3a1   :  { %v1112_v16 = vadd.f32 %v1111_v14, %v1110_v11  ;;  %v1121_v18 = vrot.slane %v1120_v15, 4  ;;  %v1263_v11 = vld [vmem:[#allocation6 + $0x4e0] sm:$0xff] }
 0x3a2   :  { %1298 = vmatpush.msrb.mxu2 %v1263_v11 }
 0x3a3   :  { %v1113_v19 = vrot.slane %v1112_v16, 2  ;;  %v1122_v20 = vadd.f32 %v1121_v18, %v1120_v15  ;;  %v1265_v15 = vld [vmem:[#allocation6 + $0x4f0] sm:$0xff]  ;;  %v1261_v18 = vld [vmem:[#allocation6 + $0x4c8] sm:$0xff] }
 0x3a4   :  { %1344 = vmatpush.msrb.mxu0 %v1265_v15  ;;  %1322 = vmatpush.msra.mxu3 %v1261_v18  ;;  %v1366_v18 = vld [vmem:[#allocation8 + $0x20] sm:$0xff] }
 0x3a5   :  { %v1114_v21 = vadd.f32 %v1113_v19, %v1112_v16  ;;  %v1123_v22 = vrot.slane %v1122_v20, 2  ;;  %v1260_v16 = vld [vmem:[#allocation6 + $0x4c0] sm:$0xff] }
 0x3a6   :  { %1299 = vmatpush.msrb.mxu2 %v1260_v16  ;;  %1323 = vmatpush.msra.mxu3 %v1258_v33  ;;  %v1365_v16 = vld [vmem:[#allocation8 + $0x18] sm:$0xff] }
 0x3a7   :  { %v1115_v23 = vrot.slane %v1114_v21, 1  ;;  %v1124_v24 = vadd.f32 %v1123_v22, %v1122_v20  ;;  %v1262_v20 = vld [vmem:[#allocation6 + $0x4d0] sm:$0xff] }
 0x3a8   :  { %1345 = vmatpush.msrb.mxu0 %v1262_v20  ;;  %1300 = vmatpush.msrb.mxu2 %v1257_v32  ;;  %v1368_v20 = vld [vmem:[#allocation8 + $0x30] sm:$0x3] }
 0x3a9   :  { %v1116_v25 = vadd.f32 %v1115_v23, %v1114_v21  ;;  %v1125_v26 = vrot.slane %v1124_v24, 1  ;;  %1324 = vmatpush.msra.mxu3 %v1255_v36 }
 0x3aa   :  { %1346 = vmatpush.msrb.mxu0 %v1259_v34 }
 0x3ab   :  { %1143 = vmatmul.f32.vlgmr.msra.gmra.mxu0 %v1116_v25  ;;  %v1126_v27 = vadd.f32 %v1125_v26, %v1124_v24  ;;  %v1182_v24 = vld [vmem:[#allocation8 + $0x72] sm:$0x1] }
 0x3ac   :  { %1347 = vmatpush.msrb.mxu0 %v1256_v37 }
 0x3ad   :  { %1164 = vmatmul.f32.vlgmr.msra.gmra.mxu1 %v1126_v27  ;;  %v1183_v27 = vld [vmem:[#allocation8 + $0x73] sm:$0x1] }
 0x428   :  { %v1144_v30 = vpop.f32.mrf.mxu0 }
 0x429   :  { %v2781_v31 = vmul.f32 0.013888889, %v1144_v30 }
 0x42a   :  { %v1165_v35 = vpop.f32.mrf.mxu1 }
 0x42b   :  { %v1169_v39 = vmul.f32 %v2781_v31, %v2781_v31  ;;  %v1168_v40 = vmul.f32 0.013888889, %v1165_v35  ;;  %v1254_v35 = vld [vmem:[#allocation6 + $0x480] sm:$0xff] }
 0x42c   :  { %1301 = vmatpush.msrb.mxu2 %v1254_v35 }
 0x42d   :  { %v1170_v29 = vsub.f32 %v1168_v40, %v1169_v39  ;;  %v1252_v39 = vld [vmem:[#allocation6 + $0x468] sm:$0xff]  ;;  %v1253_v40 = vld [vmem:[#allocation6 + $0x470] sm:$0xff] }
 0x42e   :  { %1302 = vmatpush.msrb.mxu2 %v1251_v38  ;;  %1325 = vmatpush.msra.mxu3 %v1252_v39 }
 0x42f   :  { %v1171_v48 = vadd.f32 1e-05, %v1170_v29  ;;  %1348 = vmatpush.msrb.mxu0 %v1253_v40  ;;  %v1246_v29 = vld [vmem:[#allocation6 + $0x428] sm:$0xff] }
 0x430   :  { %1326 = vmatpush.msra.mxu3 %v1249_v41 }
 0x431   :  { %2332 = vrsqrt.f32 %v1171_v48  ;;  %vm1178_vm14 = vweird.f32 %v1171_v48  ;;  %1349 = vmatpush.msrb.mxu0 %v1250_v42 }
 0x432   :  { %1327 = vmatpush.msra.mxu3 %v1246_v29 }
 0x433   :  { %1350 = vmatpush.msrb.mxu0 %v1247_v44 }
 0x434   :  { %1328 = vmatpush.msra.mxu3 %v1243_v46 }
 0x437   :  { %v2333_v10 = vpop.eup %2332 }
 0x438   :  { %v1173_v14 = vmul.f32 %v2333_v10, %v1171_v48  ;;  %vm1179_vm15 = vweird.f32 %v2333_v10  ;;  %v1244_v48 = vld [vmem:[#allocation6 + $0x410] sm:$0xff] }
 0x439   :  { %vm1180_vm0 = vmor %vm1178_vm14, %vm1179_vm15  ;;  %1351 = vmatpush.msrb.mxu0 %v1244_v48 }
 0x43a   :  { %v1174_v19 = vmul.f32 %v2333_v10, %v1173_v14 }
 0x43c   :  { %v1175_v21 = vmul.f32 0.5, %v1174_v19  ;;  %v1367_v19 = vld [vmem:[#allocation8 + $0x28] sm:$0xff] }
 0x43e   :  { %v1176_v22 = vsub.f32 1.5, %v1175_v21  ;;  %v215_v21 = vadd.s32 96, %v2493_v50 }
 0x440   :  { %v1177_v23 = vmul.f32 %v2333_v10, %v1176_v22  ;;  %v1507_v22 = vand.u32 7, %v215_v21  ;;  %v1905_v21 = vld [vmem:[#allocation6 + $0x798] sm:$0xff] }
 0x442   :  { %v1181_v25 = vsel %vm1180_vm0, %v2333_v10, %v1177_v23  ;;  %vm1623_vm3 = vcmp.eq.s32.totalorder %v1507_v22, %v2495_v51  ;;  %v1500_v23 = vand.u32 7, %v2498_v52  ;;  %v1479_v52 = vand.u32 7, %v2507_v55 }
 0x443   :  { %v1184_v26 = vmul.f32 %v1182_v24, %v1181_v25  ;;  %v1493_v24 = vand.u32 7, %v2501_v53  ;;  %v1486_v25 = vand.u32 7, %v2504_v54  ;;  %v1472_v53 = vand.u32 7, %v2513_v59 }
 0x444   :  { %vm1622_vm4 = vcmp.eq.s32.totalorder %v1500_v23, %v2495_v51  ;;  %vm1619_vm7 = vcmp.eq.s32.totalorder %v1479_v52, %v2495_v51  ;;  %v1465_v54 = vand.u32 7, %v2527_v63  ;;  %v1458_v55 = vand.u32 7, %v2539_v3  ;;  %v1898_v23 = vld [vmem:[#allocation6 + $0x760] sm:$0xff]  ;;  %v1901_v52 = vld [vmem:[#allocation6 + $0x778] sm:$0xff] }
 0x445   :  { %v1185_v28 = vmul.f32 %v1184_v26, %v2781_v31  ;;  %2260 = vmatmul.msk.f32.vlgmr.msra.gmra.mxu2 %vm1187_vm1, %v1184_v26  ;;  %v1248_v31 = vld [vmem:[#allocation6 + $0x440] sm:$0xff]  ;;  %vm1621_vm5 = vcmp.eq.s32.totalorder %v1493_v24, %v2495_v51  ;;  %vm1620_vm6 = vcmp.eq.s32.totalorder %v1486_v25, %v2495_v51  ;;  %vm1618_vm8 = vcmp.eq.s32.totalorder %v1472_v53, %v2495_v51  ;;  %v1899_v24 = vld [vmem:[#allocation6 + $0x768] sm:$0xff]  ;;  %v1900_v25 = vld [vmem:[#allocation6 + $0x770] sm:$0xff] }
 0x446   :  { %1303 = vmatpush.msrb.mxu2 %v1248_v31  ;;  %vm1616_vm10 = vcmp.eq.s32.totalorder %v1458_v55, %v2495_v51  ;;  %v1451_v59 = vand.u32 7, %v2551_v6  ;;  %v1444_v63 = vand.u32 7, %v2563_v9  ;;  %v1437_v26 = vand.u32 7, %v2575_v12  ;;  %v1894_v53 = vld [vmem:[#allocation6 + $0x740] sm:$0xff]  ;;  %v1896_v55 = vld [vmem:[#allocation6 + $0x750] sm:$0xff] }
 0x447   :  { %v1186_v30 = vsub.f32 %v1183_v27, %v1185_v28  ;;  %v1430_v6 = vand.u32 7, %v2587_v17  ;;  %v1423_v9 = vand.u32 7, %v2493_v50  ;;  %vm1710_vm0 = vcmask 1041408  }
 0x448   :  { %1304 = vmatpush.msrb.mxu2 %v1245_v43  ;;  %vm1615_vm11 = vcmp.eq.s32.totalorder %v1451_v59, %v2495_v51  ;;  %vm1614_vm12 = vcmp.eq.s32.totalorder %v1444_v63, %v2495_v51  ;;  %vm1613_vm13 = vcmp.eq.s32.totalorder %v1437_v26, %v2495_v51  ;;  %v1897_v59 = vld [vmem:[#allocation6 + $0x758] sm:$0xff]  ;;  %v1890_v63 = vld [vmem:[#allocation6 + $0x720] sm:$0xff]  ;;  %v1891_v26 = vld [vmem:[#allocation6 + $0x728] sm:$0xff] }
 0x449   :  { %2263 = vmatmul.msk.f32.vlgmr.msrb.gmra.mxu3 %vm1187_vm1, %v1186_v30  ;;  %vm1612_vm15 = vcmp.eq.s32.totalorder %v1430_v6, %v2495_v51  ;;  %vm1611_vm14 = vcmp.eq.s32.totalorder %v1423_v9, %v2495_v51  ;;  %v1892_v6 = vld [vmem:[#allocation6 + $0x730] sm:$0xff]  ;;  %v1893_v9 = vld [vmem:[#allocation6 + $0x738] sm:$0xff] }
 0x44a   :  { %1305 = vmatpush.msrb.mxu2 %v1242_v45  ;;  %2283 = vmatpush.msk.msrb.mxu3 %vm1623_vm3, %v2459_v0 }
 0x44c   :  { %2296 = vmatpush.msk.msra.mxu2 %vm1623_vm3, %v2459_v0  ;;  %2284 = vmatpush.msk.msrb.mxu3 %vm1622_vm4, %v2459_v0 }
 0x44e   :  { %2297 = vmatpush.msk.msra.mxu2 %vm1622_vm4, %v2459_v0  ;;  %2285 = vmatpush.msk.msrb.mxu3 %vm1621_vm5, %v2459_v0 }
 0x450   :  { %2298 = vmatpush.msk.msra.mxu2 %vm1621_vm5, %v2459_v0  ;;  %2286 = vmatpush.msk.msrb.mxu3 %vm1620_vm6, %v2459_v0 }
 0x452   :  { %2299 = vmatpush.msk.msra.mxu2 %vm1620_vm6, %v2459_v0  ;;  %2287 = vmatpush.msk.msrb.mxu3 %vm1619_vm7, %v2459_v0 }
 0x454   :  { %2300 = vmatpush.msk.msra.mxu2 %vm1619_vm7, %v2459_v0  ;;  %2288 = vmatpush.msk.msrb.mxu3 %vm1618_vm8, %v2459_v0  ;;  %vm1793_vm7 = vcmask 64512  }
 0x456   :  { %2301 = vmatpush.msk.msra.mxu2 %vm1618_vm8, %v2459_v0  ;;  %vm2072_vm8 = vcmask 850944  }
 0x4c8   :  { %v1208_v49 = vpop.f32.mrf.mxu2 }
 0x4c9   :  { %v1234_v56 = vperm.slane %v1208_v49, 0 }
 0x4cb   :  { %v1235_v47 = vmul.f32 %v1234_v56, %v2758_v4  ;;  %v1236_v62 = vmul.f32 %v1234_v56, %v2760_v5 }
 0x4cc   :  { %v1231_v57 = vpop.f32.mrf.mxu3 }
 0x4cd   :  { %v1237_v58 = vperm.slane %v1231_v57, 0 }
 0x4cf   :  { %v1238_v60 = vadd.f32 %v1237_v58, %v1235_v47  ;;  %v1239_v1 = vadd.f32 %v1237_v58, %v1236_v62  ;;  %v1695_v58 = vand.u32 7, %v2495_v51  ;;  %v1914_v62 = vld [vmem:[#allocation6 + $0x7e0] sm:$0xff] }
 0x4d1   :  { %v1240_v61 = vmax.f32 %v1238_v60, 0.0  ;;  %v1241_v2 = vmax.f32 %v1239_v1, 0.0  ;;  %vm1703_vm1 = vcmp.eq.s32.totalorder %v1695_v58, %v2493_v50  ;;  %v1915_v1 = vld [vmem:[#allocation6 + $0x7e8] sm:$0xff]  ;;  %v1874_v58 = vld [vmem:[#allocation6 + $0x6a0] sm:$0xff] }
 0x4d3   :  { %1306 = vmatmul.f32.vlgmr.msrb.gmra.mxu2 %v1240_v61  ;;  %1329 = vmatmul.f32.vlgmr.msra.gmra.mxu3 %v1240_v61 }
 0x4d4   :  { %1352 = vmatmul.f32.vlgmr.msrb.gmra.mxu0 %v1240_v61 }
 0x4db   :  { %1309 = vmatmul.f32.gmra.mxu2 %v1241_v2  ;;  %1332 = vmatmul.f32.gmra.mxu3 %v1241_v2 }
 0x4dc   :  { %1355 = vmatmul.f32.gmra.mxu0 %v1241_v2  ;;  %v1916_v2 = vld [vmem:[#allocation6 + $0x7f0] sm:$0xff] }
 0x551   :  { %v1353_v7 = vpop.f32.mrf.mxu0 }
 0x552   :  { %1363 = vst [vmem:[#allocation2 + $0x18] sm:$0xff] %v1353_v7 }
 0x556   :  { %v1307_v8 = vpop.f32.mrf.mxu2  ;;  %v1330_v10 = vpop.f32.mrf.mxu3 }
 0x557   :  { %1361 = vst [vmem:[#allocation2 + $0xc] sm:$0xff] %v1330_v10  ;;  %v1910_v10 = vld [vmem:[#allocation6 + $0x7c0] sm:$0xff] }
 0x559   :  { %v1356_v11 = vpop.f32.mrf.mxu0 }
 0x55a   :  { %1364 = vst [vmem:[#allocation2 + $0x20] sm:$0xf] %v1356_v11  ;;  %v1911_v11 = vld [vmem:[#allocation6 + $0x7c8] sm:$0xff] }
 0x55e   :  { %v1310_v4 = vpop.f32.mrf.mxu2  ;;  %v1333_v13 = vpop.f32.mrf.mxu3 }
 0x55f   :  { %1360 = vst [vmem:[#allocation2 + $0x8] sm:$0xf] %v1310_v4  ;;  %v1912_v4 = vld [vmem:[#allocation6 + $0x7d0] sm:$0xff] }
 0x560   :  { %1362 = vst [vmem:[#allocation2 + $0x14] sm:$0xf] %v1333_v13  ;;  %v1906_v13 = vld [vmem:[#allocation6 + $0x7a0] sm:$0xff] }
 0x561   :  { %v1373_v5 = vld [vmem:[#allocation2 + $0x20] sm:$0xf] }
 0x562   :  { %2264 = vmatpush.msk.msrb.mxu1 %vm1108_vm9, %v1373_v5  ;;  %vm1617_vm9 = vcmp.eq.s32.totalorder %v1465_v54, %v2495_v51  ;;  %v1907_v5 = vld [vmem:[#allocation6 + $0x7a8] sm:$0xff] }
 0x563   :  { %2289 = vmatpush.msk.msrb.mxu3 %vm1617_vm9, %v2459_v0  ;;  %2302 = vmatpush.msk.msra.mxu2 %vm1617_vm9, %v2459_v0  ;;  %v1895_v54 = vld [vmem:[#allocation6 + $0x748] sm:$0xff] }
 0x564   :  { %1402 = vmatpush.msrb.mxu1 %v1353_v7 }
 0x565   :  { %2290 = vmatpush.msk.msrb.mxu3 %vm1616_vm10, %v2459_v0  ;;  %2303 = vmatpush.msk.msra.mxu2 %vm1616_vm10, %v2459_v0 }
 0x566   :  { %v1370_v15 = vld [vmem:[#allocation2 + $0x8] sm:$0xff] }
 0x567   :  { %v1371_v14 = vld [vmem:[#allocation2 + $0x10] sm:$0xff]  ;;  %2291 = vmatpush.msk.msrb.mxu3 %vm1615_vm11, %v2459_v0  ;;  %2304 = vmatpush.msk.msra.mxu2 %vm1615_vm11, %v2459_v0 }
 0x568   :  { %1403 = vmatpush.msrb.mxu1 %v1371_v14  ;;  %v1908_v14 = vld [vmem:[#allocation6 + $0x7b0] sm:$0xff] }
 0x569   :  { %2292 = vmatpush.msk.msrb.mxu3 %vm1614_vm12, %v2459_v0  ;;  %2305 = vmatpush.msk.msra.mxu2 %vm1614_vm12, %v2459_v0 }
 0x56a   :  { %1404 = vmatpush.msrb.mxu1 %v1370_v15  ;;  %v1909_v15 = vld [vmem:[#allocation6 + $0x7b8] sm:$0xff] }
 0x56b   :  { %2293 = vmatpush.msk.msrb.mxu3 %vm1613_vm13, %v2459_v0  ;;  %2306 = vmatpush.msk.msra.mxu2 %vm1613_vm13, %v2459_v0 }
 0x56c   :  { %1405 = vmatpush.msrb.mxu1 %v1307_v8  ;;  %v1917_v8 = vld [vmem:[#allocation6 + $0x7f8] sm:$0xff] }
 0x56d   :  { %2265 = vmatmul.msk.f32.vlgmr.msrb.gmra.mxu1 %vm1374_vm2, %v1365_v16  ;;  %2294 = vmatpush.msk.msrb.mxu3 %vm1612_vm15, %v2459_v0 }
 0x56e   :  { %2307 = vmatpush.msk.msra.mxu2 %vm1612_vm15, %v2459_v0  ;;  %1918 = vmatpush.msra.mxu1 %v1914_v62  ;;  %v1876_v62 = vld [vmem:[#allocation6 + $0x6b0] sm:$0xff] }
 0x56f   :  { %2295 = vmatpush.msk.msrb.mxu3 %vm1611_vm14, %v2459_v0 }
 0x570   :  { %2308 = vmatpush.msk.msra.mxu2 %vm1611_vm14, %v2459_v0  ;;  %1919 = vmatpush.msra.mxu1 %v1910_v10  ;;  %v1873_v10 = vld [vmem:[#allocation6 + $0x698] sm:$0xff] }
 0x572   :  { %2005 = vmatpush.msrb.mxu2 %v1917_v8  ;;  %1920 = vmatpush.msra.mxu1 %v1906_v13  ;;  %v1872_v8 = vld [vmem:[#allocation6 + $0x690] sm:$0xff] }
 0x573   :  { %v1864_v13 = vld [vmem:[#allocation6 + $0x650] sm:$0xff] }
 0x575   :  { %2266 = vmatmul.msk.f32.gmra.mxu1 %vm1374_vm2, %v1366_v18  ;;  %v1902_v18 = vld [vmem:[#allocation6 + $0x780] sm:$0xff] }
 0x576   :  { %1921 = vmatpush.msra.mxu1 %v1902_v18  ;;  %v1861_v18 = vld [vmem:[#allocation6 + $0x638] sm:$0xff] }
 0x578   :  { %1922 = vmatpush.msra.mxu1 %v1898_v23 }
 0x57a   :  { %1923 = vmatpush.msra.mxu1 %v1894_v53 }
 0x57c   :  { %1924 = vmatpush.msra.mxu1 %v1890_v63 }
 0x57d   :  { %2267 = vmatmul.msk.f32.gmra.mxu1 %vm1374_vm2, %v1367_v19  ;;  %v1903_v19 = vld [vmem:[#allocation6 + $0x788] sm:$0xff] }
 0x585   :  { %2268 = vmatmul.msk.f32.gmra.mxu1 %vm1374_vm2, %v1368_v20  ;;  %vm1704_vm2 = vcmp.lt.s32.totalorder %v2495_v51, 104  ;;  %v1904_v20 = vld [vmem:[#allocation6 + $0x790] sm:$0xff] }
 0x586   :  { %vm1705_vm3 = vmand %vm1703_vm1, %vm1704_vm2 }
 0x587   :  { %2309 = vmatpush.msk.msra.mxu3 %vm1705_vm3, %v2459_v0  ;;  %2311 = vmatpush.msk.msra.mxu0 %vm1705_vm3, %v2459_v0  ;;  %v1913_v0 = vld [vmem:[#allocation6 + $0x7d8] sm:$0xff] }
 0x588   :  { %2006 = vmatpush.msrb.mxu2 %v1913_v0  ;;  %v1863_v0 = vld [vmem:[#allocation6 + $0x648] sm:$0xff] }
 0x589   :  { %1976 = vmatpush.msrb.mxu0 %v1916_v2  ;;  %v1870_v2 = vld [vmem:[#allocation6 + $0x680] sm:$0xff] }
 0x58a   :  { %2007 = vmatpush.msrb.mxu2 %v1909_v15  ;;  %v1859_v15 = vld [vmem:[#allocation6 + $0x628] sm:$0xff] }
 0x58b   :  { %1977 = vmatpush.msrb.mxu0 %v1912_v4  ;;  %v1862_v4 = vld [vmem:[#allocation6 + $0x640] sm:$0xff] }
 0x58c   :  { %2008 = vmatpush.msrb.mxu2 %v1905_v21  ;;  %v1856_v21 = vld [vmem:[#allocation6 + $0x610] sm:$0xff] }
 0x58d   :  { %1978 = vmatpush.msrb.mxu0 %v1908_v14  ;;  %v1858_v14 = vld [vmem:[#allocation6 + $0x620] sm:$0xff] }
 0x58e   :  { %2009 = vmatpush.msrb.mxu2 %v1901_v52 }
 0x58f   :  { %1979 = vmatpush.msrb.mxu0 %v1904_v20  ;;  %v1855_v20 = vld [vmem:[#allocation6 + $0x608] sm:$0xff] }
 0x590   :  { %2010 = vmatpush.msrb.mxu2 %v1897_v59 }
 0x591   :  { %1980 = vmatpush.msrb.mxu0 %v1900_v25 }
 0x592   :  { %2011 = vmatpush.msrb.mxu2 %v1893_v9 }
 0x593   :  { %1981 = vmatpush.msrb.mxu0 %v1896_v55 }
 0x595   :  { %1982 = vmatpush.msrb.mxu0 %v1892_v6 }
 0x5ea   :  { %v2826_v3 = vpop.f32.mrf.mxu1 }
 0x5eb   :  { %v1719_v28 = vmul.f32 %v2826_v3, %v2826_v3 }
 0x5f2   :  { %v2843_v12 = vpop.f32.mrf.mxu1 }
 0x5f3   :  { %v1720_v27 = vmul.f32 %v2843_v12, %v2843_v12  ;;  %v1708_v30 = vadd.f32 %v2843_v12, %v2826_v3 }
 0x5f5   :  { %v1723_v33 = vadd.f32 %v1720_v27, %v1719_v28  ;;  %v1886_v27 = vld [vmem:[#allocation6 + $0x700] sm:$0xff]  ;;  %v1887_v28 = vld [vmem:[#allocation6 + $0x708] sm:$0xff] }
 0x5f6   :  { %1925 = vmatpush.msra.mxu1 %v1886_v27 }
 0x5fa   :  { %v2845_v17 = vpop.f32.mrf.mxu1 }
 0x5fb   :  { %v1721_v32 = vmul.f32 %v2845_v17, %v2845_v17  ;;  %v1709_v34 = vadd.f32 %v1708_v30, %v2845_v17  ;;  %v1888_v30 = vld [vmem:[#allocation6 + $0x710] sm:$0xff] }
 0x5fc   :  { %1983 = vmatpush.msrb.mxu0 %v1888_v30 }
 0x5fd   :  { %v1724_v38 = vadd.f32 %v1723_v33, %v1721_v32  ;;  %v1889_v32 = vld [vmem:[#allocation6 + $0x718] sm:$0xff] }
 0x5fe   :  { %2012 = vmatpush.msrb.mxu2 %v1889_v32 }
 0x602   :  { %v2856_v35 = vpop.f32.mrf.mxu1 }
 0x603   :  { %v1711_v36 = vsel %vm1710_vm0, %v2856_v35, 0.0  ;;  %v1722_v37 = vmul.f32 %v2856_v35, %v2856_v35 }
 0x604   :  { %v1712_v39 = vadd.f32 %v1711_v36, %v1709_v34  ;;  %v1882_v34 = vld [vmem:[#allocation6 + $0x6e0] sm:$0xff]  ;;  %v1883_v36 = vld [vmem:[#allocation6 + $0x6e8] sm:$0xff] }
 0x605   :  { %v1725_v40 = vsel %vm1710_vm0, %v1722_v37, 0.0  ;;  %1926 = vmatpush.msra.mxu1 %v1882_v34 }
 0x606   :  { %v1713_v31 = vrot.slane %v1712_v39, 4  ;;  %v1726_v41 = vadd.f32 %v1725_v40, %v1724_v38  ;;  %v1884_v38 = vld [vmem:[#allocation6 + $0x6f0] sm:$0xff]  ;;  %v1878_v40 = vld [vmem:[#allocation6 + $0x6c0] sm:$0xff] }
 0x607   :  { %1984 = vmatpush.msrb.mxu0 %v1884_v38  ;;  %1927 = vmatpush.msra.mxu1 %v1878_v40 }
 0x608   :  { %v1714_v42 = vadd.f32 %v1713_v31, %v1712_v39  ;;  %v1727_v43 = vrot.slane %v1726_v41, 4  ;;  %v1885_v39 = vld [vmem:[#allocation6 + $0x6f8] sm:$0xff]  ;;  %v1879_v31 = vld [vmem:[#allocation6 + $0x6c8] sm:$0xff] }
 0x609   :  { %2013 = vmatpush.msrb.mxu2 %v1885_v39  ;;  %1928 = vmatpush.msra.mxu1 %v1874_v58 }
 0x60a   :  { %v1715_v29 = vrot.slane %v1714_v42, 2  ;;  %v1728_v44 = vadd.f32 %v1727_v43, %v1726_v41  ;;  %v1881_v43 = vld [vmem:[#allocation6 + $0x6d8] sm:$0xff] }
 0x60b   :  { %2014 = vmatpush.msrb.mxu2 %v1881_v43  ;;  %1929 = vmatpush.msra.mxu1 %v1870_v2  ;;  %v2052_v2 = vld [vmem:[#allocation8 + $0x48] sm:$0xff] }
 0x60c   :  { %v1716_v45 = vadd.f32 %v1715_v29, %v1714_v42  ;;  %v1729_v46 = vrot.slane %v1728_v44, 2  ;;  %v1880_v42 = vld [vmem:[#allocation6 + $0x6d0] sm:$0xff] }
 0x60d   :  { %1985 = vmatpush.msrb.mxu0 %v1880_v42 }
 0x60e   :  { %v1717_v48 = vrot.slane %v1716_v45, 1  ;;  %v1730_v49 = vadd.f32 %v1729_v46, %v1728_v44  ;;  %v1788_v46 = vld [vmem:[#allocation8 + $0x74] sm:$0x1] }
 0x60f   :  { %1986 = vmatpush.msrb.mxu0 %v1876_v62  ;;  %v2050_v62 = vld [vmem:[#allocation8 + $0x38] sm:$0xff] }
 0x610   :  { %v1718_v56 = vadd.f32 %v1717_v48, %v1716_v45  ;;  %v1731_v57 = vrot.slane %v1730_v49, 1 }
 0x611   :  { %1987 = vmatpush.msrb.mxu0 %v1872_v8  ;;  %v2054_v8 = vld [vmem:[#allocation8 + $0x58] sm:$0xff] }
 0x612   :  { %1749 = vmatmul.f32.vlgmr.msrb.gmra.mxu3 %v1718_v56  ;;  %v1732_v47 = vadd.f32 %v1731_v57, %v1730_v49  ;;  %v1789_v56 = vld [vmem:[#allocation8 + $0x75] sm:$0x1] }
 0x613   :  { %1947 = vmatpush.msrb.mxu3 %v1915_v1  ;;  %v1877_v1 = vld [vmem:[#allocation6 + $0x6b8] sm:$0xff] }
 0x614   :  { %1770 = vmatmul.f32.vlgmr.msra.gmra.mxu2 %v1732_v47 }
 0x615   :  { %1948 = vmatpush.msrb.mxu3 %v1911_v11  ;;  %2015 = vmatpush.msrb.mxu2 %v1877_v1  ;;  %v1867_v11 = vld [vmem:[#allocation6 + $0x668] sm:$0xff]  ;;  %v2051_v1 = vld [vmem:[#allocation8 + $0x40] sm:$0xff] }
 0x617   :  { %1949 = vmatpush.msrb.mxu3 %v1907_v5  ;;  %2016 = vmatpush.msrb.mxu2 %v1873_v10  ;;  %v1865_v5 = vld [vmem:[#allocation6 + $0x658] sm:$0xff]  ;;  %v2055_v10 = vld [vmem:[#allocation8 + $0x60] sm:$0xff] }
 0x619   :  { %1950 = vmatpush.msrb.mxu3 %v1903_v19  ;;  %v1854_v19 = vld [vmem:[#allocation6 + $0x600] sm:$0xff] }
 0x61b   :  { %1951 = vmatpush.msrb.mxu3 %v1899_v24 }
 0x61d   :  { %1952 = vmatpush.msrb.mxu3 %v1895_v54 }
 0x61f   :  { %1953 = vmatpush.msrb.mxu3 %v1891_v26 }
 0x621   :  { %1954 = vmatpush.msrb.mxu3 %v1887_v28 }
 0x623   :  { %1955 = vmatpush.msrb.mxu3 %v1883_v36 }
 0x625   :  { %1956 = vmatpush.msrb.mxu3 %v1879_v31 }
 0x695   :  { %v1750_v60 = vpop.f32.mrf.mxu3 }
 0x696   :  { %v2866_v61 = vmul.f32 0.00295858, %v1750_v60  ;;  %v1875_v60 = vld [vmem:[#allocation6 + $0x6a8] sm:$0xff] }
 0x697   :  { %v1771_v7 = vpop.f32.mrf.mxu2  ;;  %1957 = vmatpush.msrb.mxu3 %v1875_v60 }
 0x698   :  { %v1775_v50 = vmul.f32 %v2866_v61, %v2866_v61  ;;  %v1774_v51 = vmul.f32 0.00295858, %v1771_v7  ;;  %v1871_v7 = vld [vmem:[#allocation6 + $0x688] sm:$0xff] }
 0x699   :  { %1958 = vmatpush.msrb.mxu3 %v1871_v7  ;;  %v2053_v7 = vld [vmem:[#allocation8 + $0x50] sm:$0xff] }
 0x69a   :  { %v1776_v16 = vsub.f32 %v1774_v51, %v1775_v50  ;;  %v1868_v50 = vld [vmem:[#allocation6 + $0x670] sm:$0xff]  ;;  %v1869_v51 = vld [vmem:[#allocation6 + $0x678] sm:$0xff] }
 0x69b   :  { %1959 = vmatpush.msrb.mxu3 %v1867_v11  ;;  %1988 = vmatpush.msrb.mxu0 %v1868_v50  ;;  %v2329_v11 = vld [vmem:[#allocation8 + $0x76] ss:$0 sm:$0xff] }
 0x69c   :  { %v2870_v22 = vadd.f32 1e-05, %v1776_v16  ;;  %2017 = vmatpush.msrb.mxu2 %v1869_v51  ;;  %v1860_v16 = vld [vmem:[#allocation6 + $0x630] sm:$0xff] }
 0x69d   :  { %1960 = vmatpush.msrb.mxu3 %v1863_v0  ;;  %1989 = vmatpush.msrb.mxu0 %v1864_v13 }
 0x69e   :  { %2334 = vrsqrt.f32 %v2870_v22  ;;  %vm1784_vm5 = vweird.f32 %v2870_v22  ;;  %2018 = vmatpush.msrb.mxu2 %v1865_v5 }
 0x69f   :  { %1961 = vmatpush.msrb.mxu3 %v1859_v15  ;;  %1990 = vmatpush.msrb.mxu0 %v1860_v16 }
 0x6a0   :  { %2019 = vmatpush.msrb.mxu2 %v1861_v18 }
 0x6a1   :  { %1962 = vmatpush.msrb.mxu3 %v1855_v20  ;;  %1991 = vmatpush.msrb.mxu0 %v1856_v21 }
 0x6a4   :  { %v2335_v33 = vpop.eup %2334 }
 0x6a5   :  { %v1779_v37 = vmul.f32 %v2335_v33, %v2870_v22  ;;  %vm1785_vm4 = vweird.f32 %v2335_v33  ;;  %v1857_v22 = vld [vmem:[#allocation6 + $0x618] sm:$0xff] }
 0x6a6   :  { %vm1786_vm6 = vmor %vm1784_vm5, %vm1785_vm4  ;;  %2020 = vmatpush.msrb.mxu2 %v1857_v22 }
 0x6a7   :  { %v1780_v41 = vmul.f32 %v2335_v33, %v1779_v37 }
 0x6a9   :  { %v1781_v29 = vmul.f32 0.5, %v1780_v41 }
 0x6ab   :  { %v1782_v44 = vsub.f32 1.5, %v1781_v29 }
 0x6ad   :  { %v1783_v45 = vmul.f32 %v2335_v33, %v1782_v44 }
 0x6af   :  { %v1787_v48 = vsel %vm1786_vm6, %v2335_v33, %v1783_v45 }
 0x6b0   :  { %v1790_v49 = vmul.f32 %v1788_v46, %v1787_v48 }
 0x6b2   :  { %v1791_v57 = vmul.f32 %v1790_v49, %v2866_v61  ;;  %2310 = vmatmul.msk.f32.vlgmr.msra.gmra.mxu3 %vm1793_vm7, %v1790_v49  ;;  %v1866_v61 = vld [vmem:[#allocation6 + $0x660] sm:$0xff] }
 0x6b3   :  { %1930 = vmatpush.msra.mxu1 %v1866_v61  ;;  %v2056_v61 = vld [vmem:[#allocation8 + $0x68] sm:$0xff] }
 0x6b4   :  { %v1792_v47 = vsub.f32 %v1789_v56, %v1791_v57 }
 0x6b5   :  { %1931 = vmatpush.msra.mxu1 %v1862_v4 }
 0x6b6   :  { %2312 = vmatmul.msk.f32.vlgmr.msra.gmra.mxu0 %vm1793_vm7, %v1792_v47 }
 0x6b7   :  { %1932 = vmatpush.msra.mxu1 %v1858_v14 }
 0x6b9   :  { %1933 = vmatpush.msra.mxu1 %v1854_v19 }
 0x733   :  { %v1837_v23 = vpop.f32.mrf.mxu0 }
 0x734   :  { %v1845_v52 = vperm.slane %v1837_v23, 0 }
 0x735   :  { %v1814_v24 = vpop.f32.mrf.mxu3 }
 0x736   :  { %v1840_v25 = vperm.slane %v1814_v24, 0 }
 0x738   :  { %v1841_v53 = vmul.f32 %v1840_v25, %v2826_v3  ;;  %v1842_v55 = vmul.f32 %v1840_v25, %v2843_v12  ;;  %v1843_v26 = vmul.f32 %v1840_v25, %v2845_v17  ;;  %v1844_v27 = vmul.f32 %v1840_v25, %v2856_v35 }
 0x73a   :  { %v1846_v54 = vadd.f32 %v1845_v52, %v1841_v53  ;;  %v1847_v63 = vadd.f32 %v1845_v52, %v1842_v55  ;;  %v1848_v9 = vadd.f32 %v1845_v52, %v1843_v26  ;;  %v1849_v12 = vadd.f32 %v1845_v52, %v1844_v27 }
 0x73c   :  { %v1850_v59 = vmax.f32 %v1846_v54, 0.0  ;;  %v1851_v6 = vmax.f32 %v1847_v63, 0.0  ;;  %v1852_v3 = vmax.f32 %v1848_v9, 0.0  ;;  %v1853_v28 = vmax.f32 %v1849_v12, 0.0 }
 0x73e   :  { %1934 = vmatmul.f32.vlgmr.msra.gmra.mxu1 %v1850_v59  ;;  %1963 = vmatmul.f32.vlgmr.msrb.gmra.mxu3 %v1850_v59 }
 0x73f   :  { %1992 = vmatmul.f32.vlgmr.msrb.gmra.mxu0 %v1850_v59  ;;  %2021 = vmatmul.f32.vlgmr.msrb.gmra.mxu2 %v1850_v59 }
 0x746   :  { %1937 = vmatmul.f32.gmra.mxu1 %v1851_v6  ;;  %1966 = vmatmul.f32.gmra.mxu3 %v1851_v6 }
 0x747   :  { %1995 = vmatmul.f32.gmra.mxu0 %v1851_v6  ;;  %2024 = vmatmul.f32.gmra.mxu2 %v1851_v6 }
 0x74e   :  { %1940 = vmatmul.f32.gmra.mxu1 %v1852_v3  ;;  %1969 = vmatmul.f32.gmra.mxu3 %v1852_v3 }
 0x74f   :  { %1998 = vmatmul.f32.gmra.mxu0 %v1852_v3  ;;  %2027 = vmatmul.f32.gmra.mxu2 %v1852_v3 }
 0x756   :  { %1943 = vmatmul.f32.gmra.mxu1 %v1853_v28  ;;  %1972 = vmatmul.f32.gmra.mxu3 %v1853_v28 }
 0x757   :  { %2001 = vmatmul.f32.gmra.mxu0 %v1853_v28  ;;  %2030 = vmatmul.f32.gmra.mxu2 %v1853_v28 }
 0x7bb   :  { %v1935_v17 = vpop.f32.mrf.mxu1 }
 0x7bc   :  { %2034 = vst [vmem:[#allocation2] sm:$0xff] %v1935_v17  ;;  %v1993_v30 = vpop.f32.mrf.mxu0 }
 0x7bd   :  { %2042 = vst [vmem:[#allocation2 + $0x34] sm:$0xff] %v1993_v30 }
 0x7c1   :  { %v1964_v32 = vpop.f32.mrf.mxu3 }
 0x7c2   :  { %2038 = vst [vmem:[#allocation2 + $0x1a] sm:$0xff] %v1964_v32  ;;  %v2022_v33 = vpop.f32.mrf.mxu2 }
 0x7c3   :  { %2046 = vst [vmem:[#allocation2 + $0x4e] sm:$0xff] %v2022_v33  ;;  %v1938_v35 = vpop.f32.mrf.mxu1 }
 0x7c4   :  { %2035 = vst [vmem:[#allocation2 + $0x8] sm:$0xff] %v1938_v35  ;;  %v1996_v34 = vpop.f32.mrf.mxu0 }
 0x7c5   :  { %2043 = vst [vmem:[#allocation2 + $0x3c] sm:$0xff] %v1996_v34 }
 0x7c9   :  { %v1967_v36 = vpop.f32.mrf.mxu3 }
 0x7ca   :  { %2039 = vst [vmem:[#allocation2 + $0x22] sm:$0xff] %v1967_v36  ;;  %v2025_v37 = vpop.f32.mrf.mxu2 }
 0x7cb   :  { %2047 = vst [vmem:[#allocation2 + $0x56] sm:$0xff] %v2025_v37  ;;  %v1941_v38 = vpop.f32.mrf.mxu1 }
 0x7cc   :  { %2036 = vst [vmem:[#allocation2 + $0x10] sm:$0xff] %v1941_v38  ;;  %v1999_v39 = vpop.f32.mrf.mxu0  ;;  %v2064_v56 = vld [vmem:[#allocation2 + $0x38] sm:$0xff] }
 0x7cd   :  { %2044 = vst [vmem:[#allocation2 + $0x44] sm:$0xff] %v1999_v39 }
 0x7d1   :  { %v1970_v40 = vpop.f32.mrf.mxu3  ;;  %v2061_v58 = vld [vmem:[#allocation2 + $0x20] sm:$0xff] }
 0x7d2   :  { %2040 = vst [vmem:[#allocation2 + $0x2a] sm:$0xff] %v1970_v40  ;;  %v2028_v31 = vpop.f32.mrf.mxu2  ;;  %v2067_v46 = vld [vmem:[#allocation2 + $0x50] sm:$0xff] }
 0x7d3   :  { %2048 = vst [vmem:[#allocation2 + $0x5e] sm:$0xff] %v2028_v31  ;;  %v1944_v41 = vpop.f32.mrf.mxu1 }
 0x7d4   :  { %2037 = vst [vmem:[#allocation2 + $0x18] sm:$0x3] %v1944_v41  ;;  %v2002_v42 = vpop.f32.mrf.mxu0  ;;  %v2065_v49 = vld [vmem:[#allocation2 + $0x40] sm:$0xff] }
 0x7d5   :  { %2045 = vst [vmem:[#allocation2 + $0x4c] sm:$0x3] %v2002_v42 }
 0x7d9   :  { %v1973_v43 = vpop.f32.mrf.mxu3  ;;  %v2062_v47 = vld [vmem:[#allocation2 + $0x28] sm:$0xff] }
 0x7da   :  { %2041 = vst [vmem:[#allocation2 + $0x32] sm:$0x3] %v1973_v43  ;;  %v2031_v29 = vpop.f32.mrf.mxu2  ;;  %v2068_v45 = vld [vmem:[#allocation2 + $0x58] sm:$0xff] }
 0x7db   :  { %2049 = vst [vmem:[#allocation2 + $0x66] sm:$0x3] %v2031_v29  ;;  %v2060_v60 = vld [vmem:[#allocation2 + $0x18] sm:$0xff] }
 0x7dc   :  { %v2066_v48 = vld [vmem:[#allocation2 + $0x48] sm:$0xff] }
 0x7e1   :  { %v2063_v57 = vld [vmem:[#allocation2 + $0x30] sm:$0xff] }
 0x7e2   :  { %v2069_v44 = vld [vmem:[#allocation2 + $0x60] sm:$0xff] }
 0x7e3   :  { %2097 = vmatpush.msrb.mxu1 %v2069_v44 }
 0x7e5   :  { %2098 = vmatpush.msrb.mxu1 %v2068_v45 }
 0x7e7   :  { %2099 = vmatpush.msrb.mxu1 %v2067_v46 }
 0x7e9   :  { %2100 = vmatpush.msrb.mxu1 %v2066_v48 }
 0x7eb   :  { %2101 = vmatpush.msrb.mxu1 %v2065_v49 }
 0x7ed   :  { %2102 = vmatpush.msrb.mxu1 %v2064_v56 }
 0x7ef   :  { %2103 = vmatpush.msrb.mxu1 %v2063_v57 }
 0x7f1   :  { %2104 = vmatpush.msrb.mxu1 %v2062_v47 }
 0x7f3   :  { %2105 = vmatpush.msrb.mxu1 %v2061_v58 }
 0x7f5   :  { %2106 = vmatpush.msrb.mxu1 %v2060_v60 }
 0x7f7   :  { %2107 = vmatpush.msrb.mxu1 %v1941_v38 }
 0x7f9   :  { %2108 = vmatpush.msrb.mxu1 %v1938_v35 }
 0x7fb   :  { %2109 = vmatpush.msrb.mxu1 %v1935_v17 }
 0x7fc   :  { %2313 = vmatmul.msk.f32.vlgmr.msrb.gmra.mxu1 %vm2072_vm8, %v2050_v62 }
 0x804   :  { %2314 = vmatmul.msk.f32.gmra.mxu1 %vm2072_vm8, %v2051_v1 }
 0x80c   :  { %2315 = vmatmul.msk.f32.gmra.mxu1 %vm2072_vm8, %v2052_v2 }
 0x814   :  { %2316 = vmatmul.msk.f32.gmra.mxu1 %vm2072_vm8, %v2053_v7 }
 0x81c   :  { %2317 = vmatmul.msk.f32.gmra.mxu1 %vm2072_vm8, %v2054_v8 }
 0x824   :  { %2318 = vmatmul.msk.f32.gmra.mxu1 %vm2072_vm8, %v2055_v10 }
 0x82c   :  { %2319 = vmatmul.msk.f32.gmra.mxu1 %vm2072_vm8, %v2056_v61 }
 0x879   :  { %v2111_v50 = vpop.f32.mrf.mxu1 }
 0x87a   :  { %v2112_v51 = vadd.f32 %v2329_v11, %v2111_v50 }
 0x87c   :  { %2336 = vtanh.f32 %v2112_v51 }
 0x881   :  { %v2114_v4 = vpop.f32.mrf.mxu1 }
 0x882   :  { %v2337_v0 = vpop.eup %2336  ;;  %v2115_v13 = vadd.f32 %v2329_v11, %v2114_v4 }
 0x883   :  { %2139 = vst [vmem:[#allocation9] sm:$0xff] %v2337_v0 }
 0x884   :  { %2338 = vtanh.f32 %v2115_v13 }
 0x889   :  { %v2117_v5 = vpop.f32.mrf.mxu1 }
 0x88a   :  { %v2339_v14 = vpop.eup %2338  ;;  %v2118_v15 = vadd.f32 %v2329_v11, %v2117_v5 }
 0x88b   :  { %2140 = vst [vmem:[#allocation9 + $0x8] sm:$0xff] %v2339_v14 }
 0x88c   :  { %2340 = vtanh.f32 %v2118_v15 }
 0x891   :  { %v2120_v16 = vpop.f32.mrf.mxu1 }
 0x892   :  { %v2341_v18 = vpop.eup %2340  ;;  %v2121_v19 = vadd.f32 %v2329_v11, %v2120_v16 }
 0x893   :  { %2141 = vst [vmem:[#allocation9 + $0x10] sm:$0xff] %v2341_v18 }
 0x894   :  { %2342 = vtanh.f32 %v2121_v19 }
 0x899   :  { %v2123_v20 = vpop.f32.mrf.mxu1 }
 0x89a   :  { %v2343_v21 = vpop.eup %2342  ;;  %v2124_v22 = vadd.f32 %v2329_v11, %v2123_v20 }
 0x89b   :  { %2142 = vst [vmem:[#allocation9 + $0x18] sm:$0xff] %v2343_v21 }
 0x89c   :  { %2344 = vtanh.f32 %v2124_v22 }
 0x8a1   :  { %v2126_v23 = vpop.f32.mrf.mxu1 }
 0x8a2   :  { %v2345_v24 = vpop.eup %2344  ;;  %v2127_v25 = vadd.f32 %v2329_v11, %v2126_v23 }
 0x8a3   :  { %2143 = vst [vmem:[#allocation9 + $0x20] sm:$0xff] %v2345_v24 }
 0x8a4   :  { %2346 = vtanh.f32 %v2127_v25 }
 0x8a9   :  { %v2129_v52 = vpop.f32.mrf.mxu1 }
 0x8aa   :  { %v2347_v53 = vpop.eup %2346  ;;  %v2130_v54 = vadd.f32 %v2329_v11, %v2129_v52 }
 0x8ab   :  { %2144 = vst [vmem:[#allocation9 + $0x28] sm:$0xff] %v2347_v53 }
 0x8ac   :  { %2348 = vtanh.f32 %v2130_v54 }
 0x8b2   :  { %v2349_v55 = vpop.eup %2348 }
 0x8b3   :  { %2145 = vst [vmem:[#allocation9 + $0x30] sm:$0xff] %v2349_v55 }
 0x8b4   :  { %2158 = dma.vmem_to_hbm [thread:$0]  %s2151_s2, 896, %s2153_s5, [#allocation5], %s2457_s28, %s2457_s28, %s2458_s29  }
 0x8b5   :  { %2450 = dma.done.wait [#allocation5], 896  }
 0x8b6   :  { %2451 = vsyncadd [#allocation5], 4294966400 }
 0x8b7   :  { %2163 = vsyncpa [#allocation4], 1 }
 0x8b8   :  { %2164 = vsyncpa [#allocation7], 1 }
 0x8b9   :  { %2165 = vsyncpa [#allocation5], 1 }

</bundles_post_ra>
